<compile_context>
chip_gen: v7x
topology: tpu7x:2x2x1
jax: 0.10.0
libtpu: 0.0.40
codegen_flags: <defaults>
</compile_context>

<pallas_src>
import jax
import jax.numpy as jnp
from jax.experimental import pallas as pl
from jax.experimental.pallas import tpu as pltpu

EPS_BN = 1e-5
LRELU_SLOPE = 0.01
LANE = 128
NCOL = 8  # packed per-channel columns per block: bcat,g1,be1,b2,g2,be2,gr,ber


def _round_up(x, m):
    return (x + m - 1) // m * m


# ----------------------------- Pallas kernel ------------------------------- #

def _make_stacked_gcn_kernel(block_meta, K, Vg, Vp, G):
    """block_meta: tuple of (Ci, Co, proj) per block (compile-time static)."""
    n_blk = len(block_meta)

    def kernel(*refs):
        x_ref, adjc_ref, bavg_ref = refs[0], refs[1], refs[2]
        w_refs = refs[3:3 + 2 * n_blk]           # (wcat_0, w2_0, wcat_1, w2_1, ...)
        scal_ref = refs[3 + 2 * n_blk]           # [R, NCOL*n_blk] f32 packed scalars
        o_ref = refs[4 + 2 * n_blk]
        adj_bd = refs[5 + 2 * n_blk]             # VMEM scratch [K*Vp, Vp] bf16

        # -- spread the lane-compact adj [K, Vg, G*Vg] into a block-diagonal,
        #    K-merged [K*Vp, Vp] scratch (once per grid step; reused by all blocks).
        lane = jax.lax.broadcasted_iota(jnp.int32, (Vg, Vp), 1)
        for k in range(K):
            a_k = adjc_ref[0, k]                 # [Vg, Vp]: G graphs' adj, lane-packed
            for g in range(G):
                seg = (lane >= g * Vg) & (lane < (g + 1) * Vg)
                adj_bd[k * Vp + g * Vg:k * Vp + (g + 1) * Vg, :] = \
                    jnp.where(seg, a_k, jnp.zeros_like(a_k))

        def bn(t, gamma, beta):
            # Per-graph BatchNorm1d (training-mode stats). Segment sums go through the
            # MXU via the precomputed averaging matrix (valid nodes only); two-pass
            # variance avoids E[t^2]-mean^2 cancellation.
            mean = jnp.dot(t, bavg_ref[...], preferred_element_type=jnp.float32)
            d = t - mean
            var = jnp.dot(d * d, bavg_ref[...], preferred_element_type=jnp.float32)
            return d * (jax.lax.rsqrt(var + EPS_BN) * gamma) + beta

        h = x_ref[0].astype(jnp.float32)         # [Ci0, Vp] activation (f32)

        for b, (Ci, Co, proj) in enumerate(block_meta):
            wcat_ref, w2_ref = w_refs[2 * b], w_refs[2 * b + 1]
            c0 = b * NCOL
            hb = h.astype(jnp.bfloat16)

            # -- conv1 (GraphicalConv): K 1x1 convs, lane-concatenated -> [Co, K*Vp]
            parts = []
            for k in range(K):
                yk = jnp.dot(wcat_ref[k * Co:(k + 1) * Co, :], hb,
                             preferred_element_type=jnp.float32)
                yk = yk + scal_ref[k * Co:(k + 1) * Co, c0:c0 + 1]
                parts.append(yk.astype(jnp.bfloat16))
            y_cat = jnp.concatenate(parts, axis=1) if K > 1 else parts[0]

            # -- residual branch
            if proj:   # NodeLinearProject(Ci -> Co): conv + BN, activ='none'
                r = jnp.dot(wcat_ref[K * Co:(K + 1) * Co, :], hb,
                            preferred_element_type=jnp.float32)
                r = r + scal_ref[K * Co:(K + 1) * Co, c0:c0 + 1]
                res = bn(r, scal_ref[0:Co, c0 + 6:c0 + 7],
                         scal_ref[0:Co, c0 + 7:c0 + 8])
            else:      # Ci == Co -> identity residual
                res = h

            # -- adjacency contraction: einsum('kcv,kvw->cw') as ONE K*Vp-deep matmul;
            #    k-sum accumulates inside the MXU, block-diag keeps graphs independent.
            z = jnp.dot(y_cat, adj_bd[...], preferred_element_type=jnp.float32)

            # -- GCNBlock norm ('bn') + activ ('relu')
            z = bn(z, scal_ref[0:Co, c0 + 1:c0 + 2], scal_ref[0:Co, c0 + 2:c0 + 3])
            z = jnp.maximum(z, 0.0)

            # -- conv2: NodeLinearProject (conv + BN, activ='none')
            z2 = jnp.dot(w2_ref[...], z.astype(jnp.bfloat16),
                         preferred_element_type=jnp.float32)
            z2 = z2 + scal_ref[0:Co, c0 + 3:c0 + 4]
            z2 = bn(z2, scal_ref[0:Co, c0 + 4:c0 + 5], scal_ref[0:Co, c0 + 5:c0 + 6])

            # -- residual add + block output activation
            h = z2 + res
            if b < n_blk - 1:                    # 'lrelu' for all but the last block
                h = jnp.where(h > 0, h, LRELU_SLOPE * h)

        o_ref[0] = h.astype(o_ref.dtype)

    return kernel


# --------------------------- parameter packing ----------------------------- #

def prepare_stacked_gcn(params, K):
    """Natural (PyTorch-layout) params -> kernel operands.
    Returns (block_meta, [wcat0, w20, wcat1, w21, ...] (bf16), scal [R, NCOL*n_blk] f32)."""
    blocks = params["blocks"]
    R = 8
    for blk in blocks:
        Co = blk["w2"].shape[0]
        rows = (K + 1) * Co if "wr" in blk else K * Co
        R = max(R, rows)
    R = _round_up(R, 8)

    block_meta, w_list, scal_cols = [], [], []

    def col(v):
        v = jnp.asarray(v, jnp.float32).reshape(-1, 1)
        return jnp.pad(v, ((0, R - v.shape[0]), (0, 0)))

    for blk in blocks:
        Co, Ci = blk["w2"].shape[0], blk["w1"].shape[1]
        proj = "wr" in blk
        block_meta.append((Ci, Co, proj))
        if proj:
            wcat = jnp.concatenate([blk["w1"], blk["wr"]], axis=0)
            bcat = jnp.concatenate([blk["b1"], blk["br"]], axis=0)
        else:
            wcat, bcat = blk["w1"], blk["b1"]
        w_list.append(wcat.astype(jnp.bfloat16))
        w_list.append(blk["w2"].astype(jnp.bfloat16))

        cols = [col(bcat), col(blk["g1"]), col(blk["be1"]),
                col(blk["b2"]), col(blk["g2"]), col(blk["be2"])]
        if proj:
            cols += [col(blk["gr"]), col(blk["ber"])]
        else:
            cols += [jnp.zeros((R, 1), jnp.float32)] * 2
        scal_cols.append(jnp.concatenate(cols, axis=1))     # [R, NCOL]

    scal = jnp.concatenate(scal_cols, axis=1)                # [R, NCOL*n_blk]
    return tuple(block_meta), w_list, scal


# ------------------------------- glue (JAX) -------------------------------- #

def normalize_l2(x, axis=-1):
    return x / (jnp.linalg.norm(x, axis=axis, keepdims=True) + 1e-12)


def euclidean_dist(x, y):
    xx = jnp.sum(x * x, axis=1, keepdims=True)
    yy = jnp.sum(y * y, axis=1, keepdims=True).T
    d2 = xx + yy - 2.0 * (x @ y.T)
    return jnp.sqrt(jnp.clip(d2, 1e-12, None))


def normalize_undirected_graph(A):
    """A: [N, V, V] -> D^{-1/2} (A+I) D^{-1/2}."""
    V = A.shape[1]
    A_ = A + jnp.eye(V, dtype=A.dtype)[None]
    Dl = jnp.sum(A_, axis=2) ** (-0.5)
    Dn = jax.vmap(jnp.diag)(Dl)
    return Dn @ A_ @ Dn


def get_affinity(global_feat, kernel_size=2):
    """global_feat: [V, D] -> adj: [K, V, V]."""
    feat = normalize_l2(global_feat, axis=-1)
    d = euclidean_dist(feat, feat)
    if kernel_size == 1:
        adj = d[None]
    elif kernel_size == 2:
        adj = jnp.stack((1.0 - 0.5 * d, 0.5 * d), axis=0)
    else:
        raise ValueError("Invalid kernel_size for affinity")
    return normalize_undirected_graph(adj)


def init_params(key, in_channels, out_channels, mid_channels, kernel_size, n_blk):
    """Deterministic synthetic parameter init (shapes per module __init__)."""
    assert n_blk >= 2
    dims = ([(in_channels, mid_channels)]
            + [(mid_channels, mid_channels)] * (n_blk - 2)
            + [(mid_channels, out_channels)])
    blocks = []
    for (ci, co) in dims:
        key, k0, k1, k2, k3, k4, k5 = jax.random.split(key, 7)
        blk = {
            # GraphicalConv: Conv1d(ci -> co*K, kernel_size=1, bias=True); rows k-major
            "w1": jax.random.normal(k0, (kernel_size * co, ci), jnp.float32) / jnp.sqrt(ci),
            "b1": 0.01 * jax.random.normal(k1, (kernel_size * co, 1), jnp.float32),
            # GCNBlock BN (affine)
            "g1": jnp.ones((co, 1), jnp.float32),
            "be1": jnp.zeros((co, 1), jnp.float32),
            # NodeLinearProject: Conv1d(co -> co, 1) + BN
            "w2": jax.random.normal(k2, (co, co), jnp.float32) / jnp.sqrt(co),
            "b2": 0.01 * jax.random.normal(k3, (co, 1), jnp.float32),
            "g2": jnp.ones((co, 1), jnp.float32),
            "be2": jnp.zeros((co, 1), jnp.float32),
        }
        if ci != co:  # projection residual: NodeLinearProject(ci -> co) + BN
            blk["wr"] = jax.random.normal(k4, (co, ci), jnp.float32) / jnp.sqrt(ci)
            blk["br"] = 0.01 * jax.random.normal(k5, (co, 1), jnp.float32)
            blk["gr"] = jnp.ones((co, 1), jnp.float32)
            blk["ber"] = jnp.zeros((co, 1), jnp.float32)
        blocks.append(blk)
    return {"blocks": blocks}


def _vmem_bytes(shape, itemsize):
    s = list(shape)
    s[-1] = _round_up(s[-1], LANE)
    if len(s) >= 2:
        s[-2] = _round_up(s[-2], 8)
    n = 1
    for d in s:
        n *= int(d)
    return n * itemsize


def stacked_gcn_batch_forward(x_nvc, params, adj=None, kernel_size=2):
    """x_nvc: [N, V, C_in] -> [N, V, C_out].
    Each graph is an independent StackedGCN.forward() (per-graph BN stats)."""
    N, V, Ci0 = x_nvc.shape
    K = kernel_size
    if adj is None:  # affinity under no_grad in the reference
        adj = jax.lax.stop_gradient(
            jax.vmap(lambda f: get_affinity(f, K))(x_nvc))        # [N, K, V, V]

    block_meta, w_list, scal = prepare_stacked_gcn(params, K)
    Co_out = block_meta[-1][1]
    R = scal.shape[0]

    # ---- node-axis packing: G graphs share the 128-lane window block-diagonally ----
    if V <= LANE:
        Vg = next(s for s in (16, 32, 64, 128) if s >= V)         # divisor of 128
        Vp = LANE
        G = Vp // Vg
    else:
        Vg = Vp = _round_up(V, LANE)
        G = 1
    Ngrp = (N + G - 1) // G
    Npad = Ngrp * G

    # x: [N, V, C] -> lane-packed [Ngrp, Ci0, Vp] (G graphs per group)
    xt = jnp.transpose(x_nvc, (0, 2, 1))                           # [N, Ci0, V]
    xt = jnp.pad(xt, ((0, Npad - N), (0, 0), (0, Vg - V)))
    xp = (xt.reshape(Ngrp, G, Ci0, Vg).transpose(0, 2, 1, 3)
            .reshape(Ngrp, Ci0, Vp).astype(jnp.bfloat16))

    # adj: [N, K, V, V] -> lane-compact [Ngrp, K, Vg, G*Vg] (no 128x128 padding in HBM)
    adjp = jnp.pad(adj, ((0, Npad - N), (0, 0), (0, Vg - V), (0, Vg - V)))
    adjc = (adjp.reshape(Ngrp, G, K, Vg, Vg).transpose(0, 2, 3, 1, 4)
                .reshape(Ngrp, K, Vg, Vp).astype(jnp.bfloat16))

    # segment-averaging matrix for per-graph BN stats (only valid nodes contribute)
    ids = jnp.arange(Vp)
    same_seg = (ids[:, None] // Vg) == (ids[None, :] // Vg)
    valid_row = (ids[:, None] % Vg) < V
    bavg = jnp.where(same_seg & valid_row, 1.0 / V, 0.0).astype(jnp.float32)

    kernel = _make_stacked_gcn_kernel(block_meta, K, Vg, Vp, G)

    def full_spec(shape):
        nd = len(shape)
        return pl.BlockSpec(shape, lambda n, _nd=nd: (0,) * _nd)

    in_specs = [
        pl.BlockSpec((1, Ci0, Vp), lambda n: (n, 0, 0)),           # packed x (per group)
        pl.BlockSpec((1, K, Vg, Vp), lambda n: (n, 0, 0, 0)),      # compact adj (per group)
        full_spec(bavg.shape),                                     # BN segment-average matrix
    ]
    for w in w_list:                                               # weights: resident
        in_specs.append(full_spec(w.shape))
    in_specs.append(full_spec(scal.shape))                         # packed per-channel scalars
    out_specs = pl.BlockSpec((1, Co_out, Vp), lambda n: (n, 0, 0))

    # VMEM budget: every operand counted double-buffered, + block-diag adj scratch;
    # capped at 48 MiB (v7x has 64 MiB/TC total).
    total = 2 * (_vmem_bytes((1, Ci0, Vp), 2)
                 + _vmem_bytes((1, K, Vg, Vp), 2)
                 + _vmem_bytes(bavg.shape, 4)
                 + sum(_vmem_bytes(w.shape, 2) for w in w_list)
                 + _vmem_bytes(scal.shape, 4)
                 + _vmem_bytes((1, Co_out, Vp), 4)) \
            + _vmem_bytes((K * Vp, Vp), 2)
    vmem_limit = int(min(48 * 1024 * 1024, max(4 * 1024 * 1024, 2 * total)))

    out = pl.pallas_call(
        kernel,
        grid=(Ngrp,),
        out_shape=jax.ShapeDtypeStruct((Ngrp, Co_out, Vp), jnp.float32),
        in_specs=in_specs,
        out_specs=out_specs,
        scratch_shapes=[pltpu.VMEM((K * Vp, Vp), jnp.bfloat16)],   # block-diag K-merged adj
        compiler_params=pltpu.CompilerParams(
            dimension_semantics=("parallel",),
            vmem_limit_bytes=vmem_limit),
    )(xp, adjc, bavg, *w_list, scal)

    # unpack lanes -> per-graph node axis
    out = (out.reshape(Ngrp, Co_out, G, Vg).transpose(0, 2, 1, 3)
              .reshape(Npad, Co_out, Vg))[:N, :, :V]
    return jnp.transpose(out, (0, 2, 1))                           # [N, V, C_out]


def stacked_gcn_forward(x_vc, params, adj=None, kernel_size=2):
    """x_vc: [V, C_in] -> [V, C_out]  (StackedGCN.forward semantics)."""
    if adj is None:
        adj = jax.lax.stop_gradient(get_affinity(x_vc, kernel_size))
    return stacked_gcn_batch_forward(x_vc[None], params, adj[None], kernel_size)[0]


# --------------------------------- main ------------------------------------ #

if __name__ == "__main__":
    N, V, C_in, C_out, MID, K, N_BLK = 2, 16, 8, 16, 32, 2, 3

    key = jax.random.PRNGKey(0)
    kx, kp = jax.random.split(key)
    x = jax.random.normal(kx, (N, V, C_in), jnp.float32)
    params = init_params(kp, C_in, C_out, MID, K, N_BLK)

    y = stacked_gcn_batch_forward(x, params, adj=None, kernel_size=K)
    y = jax.block_until_ready(y)
    assert y.shape == (N, V, C_out), y.shape
    assert bool(jnp.all(jnp.isfinite(y)))

    y1 = jax.block_until_ready(stacked_gcn_forward(x[0], params, kernel_size=K))
    assert y1.shape == (V, C_out), y1.shape
    assert bool(jnp.all(jnp.isfinite(y1)))

    print("KERNEL_OK")
</pallas_src>

<mosaic_0001>
module attributes {stable_mosaic.version = 11 : i64} {
  func.func @kernel(%arg0: i32, %arg1: memref<1x8x128xbf16, #tpu.memory_space<vmem>>, %arg2: memref<1x2x16x128xbf16, #tpu.memory_space<vmem>>, %arg3: memref<128x128xf32, #tpu.memory_space<vmem>>, %arg4: memref<96x8xbf16, #tpu.memory_space<vmem>>, %arg5: memref<32x32xbf16, #tpu.memory_space<vmem>>, %arg6: memref<64x32xbf16, #tpu.memory_space<vmem>>, %arg7: memref<32x32xbf16, #tpu.memory_space<vmem>>, %arg8: memref<48x32xbf16, #tpu.memory_space<vmem>>, %arg9: memref<16x16xbf16, #tpu.memory_space<vmem>>, %arg10: memref<96x24xf32, #tpu.memory_space<vmem>>, %arg11: memref<1x16x128xf32, #tpu.memory_space<vmem>>, %arg12: memref<256x128xbf16, #tpu.memory_space<vmem>>) attributes {dimension_semantics = [#tpu.dimension_semantics<parallel>], iteration_bounds = array<i64: 1>, scalar_prefetch = 0 : i64, scratch_operands = 1 : i64, tpu.core_type = #tpu.core_type<tc>, window_params = [{transform_indices = @transform_0, window_bounds = array<i64: 1, 8, 128>}, {transform_indices = @transform_1, window_bounds = array<i64: 1, 2, 16, 128>}, {pipeline_mode = #tpu.pipeline_mode<synchronous>, transform_indices = @transform_2, window_bounds = array<i64: 128, 128>}, {pipeline_mode = #tpu.pipeline_mode<synchronous>, transform_indices = @transform_3, window_bounds = array<i64: 96, 8>}, {pipeline_mode = #tpu.pipeline_mode<synchronous>, transform_indices = @transform_4, window_bounds = array<i64: 32, 32>}, {pipeline_mode = #tpu.pipeline_mode<synchronous>, transform_indices = @transform_5, window_bounds = array<i64: 64, 32>}, {pipeline_mode = #tpu.pipeline_mode<synchronous>, transform_indices = @transform_6, window_bounds = array<i64: 32, 32>}, {pipeline_mode = #tpu.pipeline_mode<synchronous>, transform_indices = @transform_7, window_bounds = array<i64: 48, 32>}, {pipeline_mode = #tpu.pipeline_mode<synchronous>, transform_indices = @transform_8, window_bounds = array<i64: 16, 16>}, {pipeline_mode = #tpu.pipeline_mode<synchronous>, transform_indices = @transform_9, window_bounds = array<i64: 96, 24>}, {transform_indices = @transform_10, window_bounds = array<i64: 1, 16, 128>}]} {
    %0 = tpu.iota {dimensions = array<i32: 1>} : vector<16x128xi32>
    %c0 = arith.constant 0 : index
    %c0_0 = arith.constant 0 : index
    %c0_1 = arith.constant 0 : index
    %c0_2 = arith.constant 0 : index
    %1 = vector.load %arg2[%c0, %c0_0, %c0_1, %c0_2] : memref<1x2x16x128xbf16, #tpu.memory_space<vmem>>, vector<1x1x16x128xbf16>
    %2 = vector.shape_cast %1 : vector<1x1x16x128xbf16> to vector<16x128xbf16>
    %c0_i32 = arith.constant 0 : i32
    %3 = vector.broadcast %c0_i32 : i32 to vector<16x128xi32>
    %4 = arith.cmpi sge, %0, %3 : vector<16x128xi32>
    %c16_i32 = arith.constant 16 : i32
    %5 = vector.broadcast %c16_i32 : i32 to vector<16x128xi32>
    %6 = arith.cmpi slt, %0, %5 : vector<16x128xi32>
    %7 = arith.andi %4, %6 : vector<16x128xi1>
    %cst = arith.constant 0.000000e+00 : bf16
    %8 = vector.broadcast %cst : bf16 to vector<16x128xbf16>
    %9 = arith.select %7, %2, %8 : vector<16x128xi1>, vector<16x128xbf16>
    %c0_3 = arith.constant 0 : index
    %c0_4 = arith.constant 0 : index
    %10 = vector.load %arg12[%c0_3, %c0_4] : memref<256x128xbf16, #tpu.memory_space<vmem>>, vector<16x128xbf16>
    tpu.vector_store %arg12[%c0_3, %c0_4], %9 {strides = array<i32>} : memref<256x128xbf16, #tpu.memory_space<vmem>>, vector<16x128xbf16>,
    %c16_i32_5 = arith.constant 16 : i32
    %11 = vector.broadcast %c16_i32_5 : i32 to vector<16x128xi32>
    %12 = arith.cmpi sge, %0, %11 : vector<16x128xi32>
    %c32_i32 = arith.constant 32 : i32
    %13 = vector.broadcast %c32_i32 : i32 to vector<16x128xi32>
    %14 = arith.cmpi slt, %0, %13 : vector<16x128xi32>
    %15 = arith.andi %12, %14 : vector<16x128xi1>
    %cst_6 = arith.constant 0.000000e+00 : bf16
    %16 = vector.broadcast %cst_6 : bf16 to vector<16x128xbf16>
    %17 = arith.select %15, %2, %16 : vector<16x128xi1>, vector<16x128xbf16>
    %c16 = arith.constant 16 : index
    %c0_7 = arith.constant 0 : index
    %18 = vector.load %arg12[%c16, %c0_7] : memref<256x128xbf16, #tpu.memory_space<vmem>>, vector<16x128xbf16>
    tpu.vector_store %arg12[%c16, %c0_7], %17 {strides = array<i32>} : memref<256x128xbf16, #tpu.memory_space<vmem>>, vector<16x128xbf16>,
    %c32_i32_8 = arith.constant 32 : i32
    %19 = vector.broadcast %c32_i32_8 : i32 to vector<16x128xi32>
    %20 = arith.cmpi sge, %0, %19 : vector<16x128xi32>
    %c48_i32 = arith.constant 48 : i32
    %21 = vector.broadcast %c48_i32 : i32 to vector<16x128xi32>
    %22 = arith.cmpi slt, %0, %21 : vector<16x128xi32>
    %23 = arith.andi %20, %22 : vector<16x128xi1>
    %cst_9 = arith.constant 0.000000e+00 : bf16
    %24 = vector.broadcast %cst_9 : bf16 to vector<16x128xbf16>
    %25 = arith.select %23, %2, %24 : vector<16x128xi1>, vector<16x128xbf16>
    %c32 = arith.constant 32 : index
    %c0_10 = arith.constant 0 : index
    %26 = vector.load %arg12[%c32, %c0_10] : memref<256x128xbf16, #tpu.memory_space<vmem>>, vector<16x128xbf16>
    tpu.vector_store %arg12[%c32, %c0_10], %25 {strides = array<i32>} : memref<256x128xbf16, #tpu.memory_space<vmem>>, vector<16x128xbf16>,
    %c48_i32_11 = arith.constant 48 : i32
    %27 = vector.broadcast %c48_i32_11 : i32 to vector<16x128xi32>
    %28 = arith.cmpi sge, %0, %27 : vector<16x128xi32>
    %c64_i32 = arith.constant 64 : i32
    %29 = vector.broadcast %c64_i32 : i32 to vector<16x128xi32>
    %30 = arith.cmpi slt, %0, %29 : vector<16x128xi32>
    %31 = arith.andi %28, %30 : vector<16x128xi1>
    %cst_12 = arith.constant 0.000000e+00 : bf16
    %32 = vector.broadcast %cst_12 : bf16 to vector<16x128xbf16>
    %33 = arith.select %31, %2, %32 : vector<16x128xi1>, vector<16x128xbf16>
    %c48 = arith.constant 48 : index
    %c0_13 = arith.constant 0 : index
    %34 = vector.load %arg12[%c48, %c0_13] : memref<256x128xbf16, #tpu.memory_space<vmem>>, vector<16x128xbf16>
    tpu.vector_store %arg12[%c48, %c0_13], %33 {strides = array<i32>} : memref<256x128xbf16, #tpu.memory_space<vmem>>, vector<16x128xbf16>,
    %c64_i32_14 = arith.constant 64 : i32
    %35 = vector.broadcast %c64_i32_14 : i32 to vector<16x128xi32>
    %36 = arith.cmpi sge, %0, %35 : vector<16x128xi32>
    %c80_i32 = arith.constant 80 : i32
    %37 = vector.broadcast %c80_i32 : i32 to vector<16x128xi32>
    %38 = arith.cmpi slt, %0, %37 : vector<16x128xi32>
    %39 = arith.andi %36, %38 : vector<16x128xi1>
    %cst_15 = arith.constant 0.000000e+00 : bf16
    %40 = vector.broadcast %cst_15 : bf16 to vector<16x128xbf16>
    %41 = arith.select %39, %2, %40 : vector<16x128xi1>, vector<16x128xbf16>
    %c64 = arith.constant 64 : index
    %c0_16 = arith.constant 0 : index
    %42 = vector.load %arg12[%c64, %c0_16] : memref<256x128xbf16, #tpu.memory_space<vmem>>, vector<16x128xbf16>
    tpu.vector_store %arg12[%c64, %c0_16], %41 {strides = array<i32>} : memref<256x128xbf16, #tpu.memory_space<vmem>>, vector<16x128xbf16>,
    %c80_i32_17 = arith.constant 80 : i32
    %43 = vector.broadcast %c80_i32_17 : i32 to vector<16x128xi32>
    %44 = arith.cmpi sge, %0, %43 : vector<16x128xi32>
    %c96_i32 = arith.constant 96 : i32
    %45 = vector.broadcast %c96_i32 : i32 to vector<16x128xi32>
    %46 = arith.cmpi slt, %0, %45 : vector<16x128xi32>
    %47 = arith.andi %44, %46 : vector<16x128xi1>
    %cst_18 = arith.constant 0.000000e+00 : bf16
    %48 = vector.broadcast %cst_18 : bf16 to vector<16x128xbf16>
    %49 = arith.select %47, %2, %48 : vector<16x128xi1>, vector<16x128xbf16>
    %c80 = arith.constant 80 : index
    %c0_19 = arith.constant 0 : index
    %50 = vector.load %arg12[%c80, %c0_19] : memref<256x128xbf16, #tpu.memory_space<vmem>>, vector<16x128xbf16>
    tpu.vector_store %arg12[%c80, %c0_19], %49 {strides = array<i32>} : memref<256x128xbf16, #tpu.memory_space<vmem>>, vector<16x128xbf16>,
    %c96_i32_20 = arith.constant 96 : i32
    %51 = vector.broadcast %c96_i32_20 : i32 to vector<16x128xi32>
    %52 = arith.cmpi sge, %0, %51 : vector<16x128xi32>
    %c112_i32 = arith.constant 112 : i32
    %53 = vector.broadcast %c112_i32 : i32 to vector<16x128xi32>
    %54 = arith.cmpi slt, %0, %53 : vector<16x128xi32>
    %55 = arith.andi %52, %54 : vector<16x128xi1>
    %cst_21 = arith.constant 0.000000e+00 : bf16
    %56 = vector.broadcast %cst_21 : bf16 to vector<16x128xbf16>
    %57 = arith.select %55, %2, %56 : vector<16x128xi1>, vector<16x128xbf16>
    %c96 = arith.constant 96 : index
    %c0_22 = arith.constant 0 : index
    %58 = vector.load %arg12[%c96, %c0_22] : memref<256x128xbf16, #tpu.memory_space<vmem>>, vector<16x128xbf16>
    tpu.vector_store %arg12[%c96, %c0_22], %57 {strides = array<i32>} : memref<256x128xbf16, #tpu.memory_space<vmem>>, vector<16x128xbf16>,
    %c112_i32_23 = arith.constant 112 : i32
    %59 = vector.broadcast %c112_i32_23 : i32 to vector<16x128xi32>
    %60 = arith.cmpi sge, %0, %59 : vector<16x128xi32>
    %c128_i32 = arith.constant 128 : i32
    %61 = vector.broadcast %c128_i32 : i32 to vector<16x128xi32>
    %62 = arith.cmpi slt, %0, %61 : vector<16x128xi32>
    %63 = arith.andi %60, %62 : vector<16x128xi1>
    %cst_24 = arith.constant 0.000000e+00 : bf16
    %64 = vector.broadcast %cst_24 : bf16 to vector<16x128xbf16>
    %65 = arith.select %63, %2, %64 : vector<16x128xi1>, vector<16x128xbf16>
    %c112 = arith.constant 112 : index
    %c0_25 = arith.constant 0 : index
    %66 = vector.load %arg12[%c112, %c0_25] : memref<256x128xbf16, #tpu.memory_space<vmem>>, vector<16x128xbf16>
    tpu.vector_store %arg12[%c112, %c0_25], %65 {strides = array<i32>} : memref<256x128xbf16, #tpu.memory_space<vmem>>, vector<16x128xbf16>,
    %c0_26 = arith.constant 0 : index
    %c1 = arith.constant 1 : index
    %c0_27 = arith.constant 0 : index
    %c0_28 = arith.constant 0 : index
    %67 = vector.load %arg2[%c0_26, %c1, %c0_27, %c0_28] : memref<1x2x16x128xbf16, #tpu.memory_space<vmem>>, vector<1x1x16x128xbf16>
    %68 = vector.shape_cast %67 : vector<1x1x16x128xbf16> to vector<16x128xbf16>
    %c0_i32_29 = arith.constant 0 : i32
    %69 = vector.broadcast %c0_i32_29 : i32 to vector<16x128xi32>
    %70 = arith.cmpi sge, %0, %69 : vector<16x128xi32>
    %c16_i32_30 = arith.constant 16 : i32
    %71 = vector.broadcast %c16_i32_30 : i32 to vector<16x128xi32>
    %72 = arith.cmpi slt, %0, %71 : vector<16x128xi32>
    %73 = arith.andi %70, %72 : vector<16x128xi1>
    %cst_31 = arith.constant 0.000000e+00 : bf16
    %74 = vector.broadcast %cst_31 : bf16 to vector<16x128xbf16>
    %75 = arith.select %73, %68, %74 : vector<16x128xi1>, vector<16x128xbf16>
    %c128 = arith.constant 128 : index
    %c0_32 = arith.constant 0 : index
    %76 = vector.load %arg12[%c128, %c0_32] : memref<256x128xbf16, #tpu.memory_space<vmem>>, vector<16x128xbf16>
    tpu.vector_store %arg12[%c128, %c0_32], %75 {strides = array<i32>} : memref<256x128xbf16, #tpu.memory_space<vmem>>, vector<16x128xbf16>,
    %c16_i32_33 = arith.constant 16 : i32
    %77 = vector.broadcast %c16_i32_33 : i32 to vector<16x128xi32>
    %78 = arith.cmpi sge, %0, %77 : vector<16x128xi32>
    %c32_i32_34 = arith.constant 32 : i32
    %79 = vector.broadcast %c32_i32_34 : i32 to vector<16x128xi32>
    %80 = arith.cmpi slt, %0, %79 : vector<16x128xi32>
    %81 = arith.andi %78, %80 : vector<16x128xi1>
    %cst_35 = arith.constant 0.000000e+00 : bf16
    %82 = vector.broadcast %cst_35 : bf16 to vector<16x128xbf16>
    %83 = arith.select %81, %68, %82 : vector<16x128xi1>, vector<16x128xbf16>
    %c144 = arith.constant 144 : index
    %c0_36 = arith.constant 0 : index
    %84 = vector.load %arg12[%c144, %c0_36] : memref<256x128xbf16, #tpu.memory_space<vmem>>, vector<16x128xbf16>
    tpu.vector_store %arg12[%c144, %c0_36], %83 {strides = array<i32>} : memref<256x128xbf16, #tpu.memory_space<vmem>>, vector<16x128xbf16>,
    %c32_i32_37 = arith.constant 32 : i32
    %85 = vector.broadcast %c32_i32_37 : i32 to vector<16x128xi32>
    %86 = arith.cmpi sge, %0, %85 : vector<16x128xi32>
    %c48_i32_38 = arith.constant 48 : i32
    %87 = vector.broadcast %c48_i32_38 : i32 to vector<16x128xi32>
    %88 = arith.cmpi slt, %0, %87 : vector<16x128xi32>
    %89 = arith.andi %86, %88 : vector<16x128xi1>
    %cst_39 = arith.constant 0.000000e+00 : bf16
    %90 = vector.broadcast %cst_39 : bf16 to vector<16x128xbf16>
    %91 = arith.select %89, %68, %90 : vector<16x128xi1>, vector<16x128xbf16>
    %c160 = arith.constant 160 : index
    %c0_40 = arith.constant 0 : index
    %92 = vector.load %arg12[%c160, %c0_40] : memref<256x128xbf16, #tpu.memory_space<vmem>>, vector<16x128xbf16>
    tpu.vector_store %arg12[%c160, %c0_40], %91 {strides = array<i32>} : memref<256x128xbf16, #tpu.memory_space<vmem>>, vector<16x128xbf16>,
    %c48_i32_41 = arith.constant 48 : i32
    %93 = vector.broadcast %c48_i32_41 : i32 to vector<16x128xi32>
    %94 = arith.cmpi sge, %0, %93 : vector<16x128xi32>
    %c64_i32_42 = arith.constant 64 : i32
    %95 = vector.broadcast %c64_i32_42 : i32 to vector<16x128xi32>
    %96 = arith.cmpi slt, %0, %95 : vector<16x128xi32>
    %97 = arith.andi %94, %96 : vector<16x128xi1>
    %cst_43 = arith.constant 0.000000e+00 : bf16
    %98 = vector.broadcast %cst_43 : bf16 to vector<16x128xbf16>
    %99 = arith.select %97, %68, %98 : vector<16x128xi1>, vector<16x128xbf16>
    %c176 = arith.constant 176 : index
    %c0_44 = arith.constant 0 : index
    %100 = vector.load %arg12[%c176, %c0_44] : memref<256x128xbf16, #tpu.memory_space<vmem>>, vector<16x128xbf16>
    tpu.vector_store %arg12[%c176, %c0_44], %99 {strides = array<i32>} : memref<256x128xbf16, #tpu.memory_space<vmem>>, vector<16x128xbf16>,
    %c64_i32_45 = arith.constant 64 : i32
    %101 = vector.broadcast %c64_i32_45 : i32 to vector<16x128xi32>
    %102 = arith.cmpi sge, %0, %101 : vector<16x128xi32>
    %c80_i32_46 = arith.constant 80 : i32
    %103 = vector.broadcast %c80_i32_46 : i32 to vector<16x128xi32>
    %104 = arith.cmpi slt, %0, %103 : vector<16x128xi32>
    %105 = arith.andi %102, %104 : vector<16x128xi1>
    %cst_47 = arith.constant 0.000000e+00 : bf16
    %106 = vector.broadcast %cst_47 : bf16 to vector<16x128xbf16>
    %107 = arith.select %105, %68, %106 : vector<16x128xi1>, vector<16x128xbf16>
    %c192 = arith.constant 192 : index
    %c0_48 = arith.constant 0 : index
    %108 = vector.load %arg12[%c192, %c0_48] : memref<256x128xbf16, #tpu.memory_space<vmem>>, vector<16x128xbf16>
    tpu.vector_store %arg12[%c192, %c0_48], %107 {strides = array<i32>} : memref<256x128xbf16, #tpu.memory_space<vmem>>, vector<16x128xbf16>,
    %c80_i32_49 = arith.constant 80 : i32
    %109 = vector.broadcast %c80_i32_49 : i32 to vector<16x128xi32>
    %110 = arith.cmpi sge, %0, %109 : vector<16x128xi32>
    %c96_i32_50 = arith.constant 96 : i32
    %111 = vector.broadcast %c96_i32_50 : i32 to vector<16x128xi32>
    %112 = arith.cmpi slt, %0, %111 : vector<16x128xi32>
    %113 = arith.andi %110, %112 : vector<16x128xi1>
    %cst_51 = arith.constant 0.000000e+00 : bf16
    %114 = vector.broadcast %cst_51 : bf16 to vector<16x128xbf16>
    %115 = arith.select %113, %68, %114 : vector<16x128xi1>, vector<16x128xbf16>
    %c208 = arith.constant 208 : index
    %c0_52 = arith.constant 0 : index
    %116 = vector.load %arg12[%c208, %c0_52] : memref<256x128xbf16, #tpu.memory_space<vmem>>, vector<16x128xbf16>
    tpu.vector_store %arg12[%c208, %c0_52], %115 {strides = array<i32>} : memref<256x128xbf16, #tpu.memory_space<vmem>>, vector<16x128xbf16>,
    %c96_i32_53 = arith.constant 96 : i32
    %117 = vector.broadcast %c96_i32_53 : i32 to vector<16x128xi32>
    %118 = arith.cmpi sge, %0, %117 : vector<16x128xi32>
    %c112_i32_54 = arith.constant 112 : i32
    %119 = vector.broadcast %c112_i32_54 : i32 to vector<16x128xi32>
    %120 = arith.cmpi slt, %0, %119 : vector<16x128xi32>
    %121 = arith.andi %118, %120 : vector<16x128xi1>
    %cst_55 = arith.constant 0.000000e+00 : bf16
    %122 = vector.broadcast %cst_55 : bf16 to vector<16x128xbf16>
    %123 = arith.select %121, %68, %122 : vector<16x128xi1>, vector<16x128xbf16>
    %c224 = arith.constant 224 : index
    %c0_56 = arith.constant 0 : index
    %124 = vector.load %arg12[%c224, %c0_56] : memref<256x128xbf16, #tpu.memory_space<vmem>>, vector<16x128xbf16>
    tpu.vector_store %arg12[%c224, %c0_56], %123 {strides = array<i32>} : memref<256x128xbf16, #tpu.memory_space<vmem>>, vector<16x128xbf16>,
    %c112_i32_57 = arith.constant 112 : i32
    %125 = vector.broadcast %c112_i32_57 : i32 to vector<16x128xi32>
    %126 = arith.cmpi sge, %0, %125 : vector<16x128xi32>
    %c128_i32_58 = arith.constant 128 : i32
    %127 = vector.broadcast %c128_i32_58 : i32 to vector<16x128xi32>
    %128 = arith.cmpi slt, %0, %127 : vector<16x128xi32>
    %129 = arith.andi %126, %128 : vector<16x128xi1>
    %cst_59 = arith.constant 0.000000e+00 : bf16
    %130 = vector.broadcast %cst_59 : bf16 to vector<16x128xbf16>
    %131 = arith.select %129, %68, %130 : vector<16x128xi1>, vector<16x128xbf16>
    %c240 = arith.constant 240 : index
    %c0_60 = arith.constant 0 : index
    %132 = vector.load %arg12[%c240, %c0_60] : memref<256x128xbf16, #tpu.memory_space<vmem>>, vector<16x128xbf16>
    tpu.vector_store %arg12[%c240, %c0_60], %131 {strides = array<i32>} : memref<256x128xbf16, #tpu.memory_space<vmem>>, vector<16x128xbf16>,
    %c0_61 = arith.constant 0 : index
    %c0_62 = arith.constant 0 : index
    %c0_63 = arith.constant 0 : index
    %133 = vector.load %arg1[%c0_61, %c0_62, %c0_63] : memref<1x8x128xbf16, #tpu.memory_space<vmem>>, vector<1x8x128xbf16>
    %134 = vector.shape_cast %133 : vector<1x8x128xbf16> to vector<8x128xbf16>
    %135 = arith.extf %134 : vector<8x128xbf16> to vector<8x128xf32>
    %136 = arith.truncf %135 : vector<8x128xf32> to vector<8x128xbf16>
    %c0_64 = arith.constant 0 : index
    %c0_65 = arith.constant 0 : index
    %137 = vector.load %arg4[%c0_64, %c0_65] : memref<96x8xbf16, #tpu.memory_space<vmem>>, vector<32x8xbf16>
    %cst_66 = arith.constant dense<0.000000e+00> : vector<32x128xf32>
    %138 = tpu.matmul %137, %136, %cst_66 {dimension_numbers = #tpu.dot_dimension_numbers<[1], [0], [0], [1], [0, 0, 1, 1], [], []>} : vector<32x8xbf16>, vector<8x128xbf16>, vector<32x128xf32> -> vector<32x128xf32>
    %c0_67 = arith.constant 0 : index
    %c0_68 = arith.constant 0 : index
    %139 = vector.load %arg10[%c0_67, %c0_68] : memref<96x24xf32, #tpu.memory_space<vmem>>, vector<32x1xf32>
    %140 = vector.broadcast %139 : vector<32x1xf32> to vector<32x128xf32>
    %141 = arith.addf %138, %140 : vector<32x128xf32>
    %142 = arith.truncf %141 : vector<32x128xf32> to vector<32x128xbf16>
    %c32_69 = arith.constant 32 : index
    %c0_70 = arith.constant 0 : index
    %143 = vector.load %arg4[%c32_69, %c0_70] : memref<96x8xbf16, #tpu.memory_space<vmem>>, vector<32x8xbf16>
    %cst_71 = arith.constant dense<0.000000e+00> : vector<32x128xf32>
    %144 = tpu.matmul %143, %136, %cst_71 {dimension_numbers = #tpu.dot_dimension_numbers<[1], [0], [0], [1], [0, 0, 1, 1], [], []>} : vector<32x8xbf16>, vector<8x128xbf16>, vector<32x128xf32> -> vector<32x128xf32>
    %c32_72 = arith.constant 32 : index
    %c0_73 = arith.constant 0 : index
    %145 = vector.load %arg10[%c32_72, %c0_73] : memref<96x24xf32, #tpu.memory_space<vmem>>, vector<32x1xf32>
    %146 = vector.broadcast %145 : vector<32x1xf32> to vector<32x128xf32>
    %147 = arith.addf %144, %146 : vector<32x128xf32>
    %148 = arith.truncf %147 : vector<32x128xf32> to vector<32x128xbf16>
    %149 = tpu.concatenate %142, %148 in 1 : vector<32x128xbf16>, vector<32x128xbf16> -> vector<32x256xbf16>
    %c64_74 = arith.constant 64 : index
    %c0_75 = arith.constant 0 : index
    %150 = vector.load %arg4[%c64_74, %c0_75] : memref<96x8xbf16, #tpu.memory_space<vmem>>, vector<32x8xbf16>
    %cst_76 = arith.constant dense<0.000000e+00> : vector<32x128xf32>
    %151 = tpu.matmul %150, %136, %cst_76 {dimension_numbers = #tpu.dot_dimension_numbers<[1], [0], [0], [1], [0, 0, 1, 1], [], []>} : vector<32x8xbf16>, vector<8x128xbf16>, vector<32x128xf32> -> vector<32x128xf32>
    %c64_77 = arith.constant 64 : index
    %c0_78 = arith.constant 0 : index
    %152 = vector.load %arg10[%c64_77, %c0_78] : memref<96x24xf32, #tpu.memory_space<vmem>>, vector<32x1xf32>
    %153 = vector.broadcast %152 : vector<32x1xf32> to vector<32x128xf32>
    %154 = arith.addf %151, %153 : vector<32x128xf32>
    %c0_79 = arith.constant 0 : index
    %c6 = arith.constant 6 : index
    %155 = vector.load %arg10[%c0_79, %c6] : memref<96x24xf32, #tpu.memory_space<vmem>>, vector<32x1xf32>
    %c0_80 = arith.constant 0 : index
    %c7 = arith.constant 7 : index
    %156 = vector.load %arg10[%c0_80, %c7] : memref<96x24xf32, #tpu.memory_space<vmem>>, vector<32x1xf32>
    %c0_81 = arith.constant 0 : index
    %c0_82 = arith.constant 0 : index
    %157 = vector.load %arg3[%c0_81, %c0_82] : memref<128x128xf32, #tpu.memory_space<vmem>>, vector<128x128xf32>
    %cst_83 = arith.constant dense<0.000000e+00> : vector<32x128xf32>
    %158 = tpu.matmul %154, %157, %cst_83 {dimension_numbers = #tpu.dot_dimension_numbers<[1], [0], [0], [1], [0, 0, 1, 1], [], []>} : vector<32x128xf32>, vector<128x128xf32>, vector<32x128xf32> -> vector<32x128xf32>
    %159 = arith.subf %154, %158 : vector<32x128xf32>
    %160 = arith.mulf %159, %159 : vector<32x128xf32>
    %c0_84 = arith.constant 0 : index
    %c0_85 = arith.constant 0 : index
    %161 = vector.load %arg3[%c0_84, %c0_85] : memref<128x128xf32, #tpu.memory_space<vmem>>, vector<128x128xf32>
    %cst_86 = arith.constant dense<0.000000e+00> : vector<32x128xf32>
    %162 = tpu.matmul %160, %161, %cst_86 {dimension_numbers = #tpu.dot_dimension_numbers<[1], [0], [0], [1], [0, 0, 1, 1], [], []>} : vector<32x128xf32>, vector<128x128xf32>, vector<32x128xf32> -> vector<32x128xf32>
    %cst_87 = arith.constant 9.99999974E-6 : f32
    %163 = vector.broadcast %cst_87 : f32 to vector<32x128xf32>
    %164 = arith.addf %162, %163 : vector<32x128xf32>
    %165 = math.rsqrt %164 : vector<32x128xf32>
    %166 = vector.broadcast %155 : vector<32x1xf32> to vector<32x128xf32>
    %167 = arith.mulf %165, %166 : vector<32x128xf32>
    %168 = arith.mulf %159, %167 : vector<32x128xf32>
    %169 = vector.broadcast %156 : vector<32x1xf32> to vector<32x128xf32>
    %170 = arith.addf %168, %169 : vector<32x128xf32>
    %c0_88 = arith.constant 0 : index
    %c0_89 = arith.constant 0 : index
    %171 = vector.load %arg12[%c0_88, %c0_89] : memref<256x128xbf16, #tpu.memory_space<vmem>>, vector<256x128xbf16>
    %cst_90 = arith.constant dense<0.000000e+00> : vector<32x128xf32>
    %172 = tpu.matmul %149, %171, %cst_90 {dimension_numbers = #tpu.dot_dimension_numbers<[1], [0], [0], [1], [0, 0, 1, 1], [], []>} : vector<32x256xbf16>, vector<256x128xbf16>, vector<32x128xf32> -> vector<32x128xf32>
    %c0_91 = arith.constant 0 : index
    %c1_92 = arith.constant 1 : index
    %173 = vector.load %arg10[%c0_91, %c1_92] : memref<96x24xf32, #tpu.memory_space<vmem>>, vector<32x1xf32>
    %c0_93 = arith.constant 0 : index
    %c2 = arith.constant 2 : index
    %174 = vector.load %arg10[%c0_93, %c2] : memref<96x24xf32, #tpu.memory_space<vmem>>, vector<32x1xf32>
    %c0_94 = arith.constant 0 : index
    %c0_95 = arith.constant 0 : index
    %175 = vector.load %arg3[%c0_94, %c0_95] : memref<128x128xf32, #tpu.memory_space<vmem>>, vector<128x128xf32>
    %cst_96 = arith.constant dense<0.000000e+00> : vector<32x128xf32>
    %176 = tpu.matmul %172, %175, %cst_96 {dimension_numbers = #tpu.dot_dimension_numbers<[1], [0], [0], [1], [0, 0, 1, 1], [], []>} : vector<32x128xf32>, vector<128x128xf32>, vector<32x128xf32> -> vector<32x128xf32>
    %177 = arith.subf %172, %176 : vector<32x128xf32>
    %178 = arith.mulf %177, %177 : vector<32x128xf32>
    %c0_97 = arith.constant 0 : index
    %c0_98 = arith.constant 0 : index
    %179 = vector.load %arg3[%c0_97, %c0_98] : memref<128x128xf32, #tpu.memory_space<vmem>>, vector<128x128xf32>
    %cst_99 = arith.constant dense<0.000000e+00> : vector<32x128xf32>
    %180 = tpu.matmul %178, %179, %cst_99 {dimension_numbers = #tpu.dot_dimension_numbers<[1], [0], [0], [1], [0, 0, 1, 1], [], []>} : vector<32x128xf32>, vector<128x128xf32>, vector<32x128xf32> -> vector<32x128xf32>
    %cst_100 = arith.constant 9.99999974E-6 : f32
    %181 = vector.broadcast %cst_100 : f32 to vector<32x128xf32>
    %182 = arith.addf %180, %181 : vector<32x128xf32>
    %183 = math.rsqrt %182 : vector<32x128xf32>
    %184 = vector.broadcast %173 : vector<32x1xf32> to vector<32x128xf32>
    %185 = arith.mulf %183, %184 : vector<32x128xf32>
    %186 = arith.mulf %177, %185 : vector<32x128xf32>
    %187 = vector.broadcast %174 : vector<32x1xf32> to vector<32x128xf32>
    %188 = arith.addf %186, %187 : vector<32x128xf32>
    %cst_101 = arith.constant 0.000000e+00 : f32
    %189 = vector.broadcast %cst_101 : f32 to vector<32x128xf32>
    %190 = arith.maximumf %188, %189 : vector<32x128xf32>
    %c0_102 = arith.constant 0 : index
    %c0_103 = arith.constant 0 : index
    %191 = vector.load %arg5[%c0_102, %c0_103] : memref<32x32xbf16, #tpu.memory_space<vmem>>, vector<32x32xbf16>
    %192 = arith.truncf %190 : vector<32x128xf32> to vector<32x128xbf16>
    %cst_104 = arith.constant dense<0.000000e+00> : vector<32x128xf32>
    %193 = tpu.matmul %191, %192, %cst_104 {dimension_numbers = #tpu.dot_dimension_numbers<[1], [0], [0], [1], [0, 0, 1, 1], [], []>} : vector<32x32xbf16>, vector<32x128xbf16>, vector<32x128xf32> -> vector<32x128xf32>
    %c0_105 = arith.constant 0 : index
    %c3 = arith.constant 3 : index
    %194 = vector.load %arg10[%c0_105, %c3] : memref<96x24xf32, #tpu.memory_space<vmem>>, vector<32x1xf32>
    %195 = vector.broadcast %194 : vector<32x1xf32> to vector<32x128xf32>
    %196 = arith.addf %193, %195 : vector<32x128xf32>
    %c0_106 = arith.constant 0 : index
    %c4 = arith.constant 4 : index
    %197 = vector.load %arg10[%c0_106, %c4] : memref<96x24xf32, #tpu.memory_space<vmem>>, vector<32x1xf32>
    %c0_107 = arith.constant 0 : index
    %c5 = arith.constant 5 : index
    %198 = vector.load %arg10[%c0_107, %c5] : memref<96x24xf32, #tpu.memory_space<vmem>>, vector<32x1xf32>
    %c0_108 = arith.constant 0 : index
    %c0_109 = arith.constant 0 : index
    %199 = vector.load %arg3[%c0_108, %c0_109] : memref<128x128xf32, #tpu.memory_space<vmem>>, vector<128x128xf32>
    %cst_110 = arith.constant dense<0.000000e+00> : vector<32x128xf32>
    %200 = tpu.matmul %196, %199, %cst_110 {dimension_numbers = #tpu.dot_dimension_numbers<[1], [0], [0], [1], [0, 0, 1, 1], [], []>} : vector<32x128xf32>, vector<128x128xf32>, vector<32x128xf32> -> vector<32x128xf32>
    %201 = arith.subf %196, %200 : vector<32x128xf32>
    %202 = arith.mulf %201, %201 : vector<32x128xf32>
    %c0_111 = arith.constant 0 : index
    %c0_112 = arith.constant 0 : index
    %203 = vector.load %arg3[%c0_111, %c0_112] : memref<128x128xf32, #tpu.memory_space<vmem>>, vector<128x128xf32>
    %cst_113 = arith.constant dense<0.000000e+00> : vector<32x128xf32>
    %204 = tpu.matmul %202, %203, %cst_113 {dimension_numbers = #tpu.dot_dimension_numbers<[1], [0], [0], [1], [0, 0, 1, 1], [], []>} : vector<32x128xf32>, vector<128x128xf32>, vector<32x128xf32> -> vector<32x128xf32>
    %cst_114 = arith.constant 9.99999974E-6 : f32
    %205 = vector.broadcast %cst_114 : f32 to vector<32x128xf32>
    %206 = arith.addf %204, %205 : vector<32x128xf32>
    %207 = math.rsqrt %206 : vector<32x128xf32>
    %208 = vector.broadcast %197 : vector<32x1xf32> to vector<32x128xf32>
    %209 = arith.mulf %207, %208 : vector<32x128xf32>
    %210 = arith.mulf %201, %209 : vector<32x128xf32>
    %211 = vector.broadcast %198 : vector<32x1xf32> to vector<32x128xf32>
    %212 = arith.addf %210, %211 : vector<32x128xf32>
    %213 = arith.addf %212, %170 : vector<32x128xf32>
    %cst_115 = arith.constant 0.000000e+00 : f32
    %214 = vector.broadcast %cst_115 : f32 to vector<32x128xf32>
    %215 = arith.cmpf ogt, %213, %214 : vector<32x128xf32>
    %cst_116 = arith.constant 0.00999999977 : f32
    %216 = vector.broadcast %cst_116 : f32 to vector<32x128xf32>
    %217 = arith.mulf %216, %213 : vector<32x128xf32>
    %218 = arith.select %215, %213, %217 : vector<32x128xi1>, vector<32x128xf32>
    %219 = arith.truncf %218 : vector<32x128xf32> to vector<32x128xbf16>
    %c0_117 = arith.constant 0 : index
    %c0_118 = arith.constant 0 : index
    %220 = vector.load %arg6[%c0_117, %c0_118] : memref<64x32xbf16, #tpu.memory_space<vmem>>, vector<32x32xbf16>
    %cst_119 = arith.constant dense<0.000000e+00> : vector<32x128xf32>
    %221 = tpu.matmul %220, %219, %cst_119 {dimension_numbers = #tpu.dot_dimension_numbers<[1], [0], [0], [1], [0, 0, 1, 1], [], []>} : vector<32x32xbf16>, vector<32x128xbf16>, vector<32x128xf32> -> vector<32x128xf32>
    %c0_120 = arith.constant 0 : index
    %c8 = arith.constant 8 : index
    %222 = vector.load %arg10[%c0_120, %c8] : memref<96x24xf32, #tpu.memory_space<vmem>>, vector<32x1xf32>
    %223 = vector.broadcast %222 : vector<32x1xf32> to vector<32x128xf32>
    %224 = arith.addf %221, %223 : vector<32x128xf32>
    %225 = arith.truncf %224 : vector<32x128xf32> to vector<32x128xbf16>
    %c32_121 = arith.constant 32 : index
    %c0_122 = arith.constant 0 : index
    %226 = vector.load %arg6[%c32_121, %c0_122] : memref<64x32xbf16, #tpu.memory_space<vmem>>, vector<32x32xbf16>
    %cst_123 = arith.constant dense<0.000000e+00> : vector<32x128xf32>
    %227 = tpu.matmul %226, %219, %cst_123 {dimension_numbers = #tpu.dot_dimension_numbers<[1], [0], [0], [1], [0, 0, 1, 1], [], []>} : vector<32x32xbf16>, vector<32x128xbf16>, vector<32x128xf32> -> vector<32x128xf32>
    %c32_124 = arith.constant 32 : index
    %c8_125 = arith.constant 8 : index
    %228 = vector.load %arg10[%c32_124, %c8_125] : memref<96x24xf32, #tpu.memory_space<vmem>>, vector<32x1xf32>
    %229 = vector.broadcast %228 : vector<32x1xf32> to vector<32x128xf32>
    %230 = arith.addf %227, %229 : vector<32x128xf32>
    %231 = arith.truncf %230 : vector<32x128xf32> to vector<32x128xbf16>
    %232 = tpu.concatenate %225, %231 in 1 : vector<32x128xbf16>, vector<32x128xbf16> -> vector<32x256xbf16>
    %c0_126 = arith.constant 0 : index
    %c0_127 = arith.constant 0 : index
    %233 = vector.load %arg12[%c0_126, %c0_127] : memref<256x128xbf16, #tpu.memory_space<vmem>>, vector<256x128xbf16>
    %cst_128 = arith.constant dense<0.000000e+00> : vector<32x128xf32>
    %234 = tpu.matmul %232, %233, %cst_128 {dimension_numbers = #tpu.dot_dimension_numbers<[1], [0], [0], [1], [0, 0, 1, 1], [], []>} : vector<32x256xbf16>, vector<256x128xbf16>, vector<32x128xf32> -> vector<32x128xf32>
    %c0_129 = arith.constant 0 : index
    %c9 = arith.constant 9 : index
    %235 = vector.load %arg10[%c0_129, %c9] : memref<96x24xf32, #tpu.memory_space<vmem>>, vector<32x1xf32>
    %c0_130 = arith.constant 0 : index
    %c10 = arith.constant 10 : index
    %236 = vector.load %arg10[%c0_130, %c10] : memref<96x24xf32, #tpu.memory_space<vmem>>, vector<32x1xf32>
    %c0_131 = arith.constant 0 : index
    %c0_132 = arith.constant 0 : index
    %237 = vector.load %arg3[%c0_131, %c0_132] : memref<128x128xf32, #tpu.memory_space<vmem>>, vector<128x128xf32>
    %cst_133 = arith.constant dense<0.000000e+00> : vector<32x128xf32>
    %238 = tpu.matmul %234, %237, %cst_133 {dimension_numbers = #tpu.dot_dimension_numbers<[1], [0], [0], [1], [0, 0, 1, 1], [], []>} : vector<32x128xf32>, vector<128x128xf32>, vector<32x128xf32> -> vector<32x128xf32>
    %239 = arith.subf %234, %238 : vector<32x128xf32>
    %240 = arith.mulf %239, %239 : vector<32x128xf32>
    %c0_134 = arith.constant 0 : index
    %c0_135 = arith.constant 0 : index
    %241 = vector.load %arg3[%c0_134, %c0_135] : memref<128x128xf32, #tpu.memory_space<vmem>>, vector<128x128xf32>
    %cst_136 = arith.constant dense<0.000000e+00> : vector<32x128xf32>
    %242 = tpu.matmul %240, %241, %cst_136 {dimension_numbers = #tpu.dot_dimension_numbers<[1], [0], [0], [1], [0, 0, 1, 1], [], []>} : vector<32x128xf32>, vector<128x128xf32>, vector<32x128xf32> -> vector<32x128xf32>
    %cst_137 = arith.constant 9.99999974E-6 : f32
    %243 = vector.broadcast %cst_137 : f32 to vector<32x128xf32>
    %244 = arith.addf %242, %243 : vector<32x128xf32>
    %245 = math.rsqrt %244 : vector<32x128xf32>
    %246 = vector.broadcast %235 : vector<32x1xf32> to vector<32x128xf32>
    %247 = arith.mulf %245, %246 : vector<32x128xf32>
    %248 = arith.mulf %239, %247 : vector<32x128xf32>
    %249 = vector.broadcast %236 : vector<32x1xf32> to vector<32x128xf32>
    %250 = arith.addf %248, %249 : vector<32x128xf32>
    %cst_138 = arith.constant 0.000000e+00 : f32
    %251 = vector.broadcast %cst_138 : f32 to vector<32x128xf32>
    %252 = arith.maximumf %250, %251 : vector<32x128xf32>
    %c0_139 = arith.constant 0 : index
    %c0_140 = arith.constant 0 : index
    %253 = vector.load %arg7[%c0_139, %c0_140] : memref<32x32xbf16, #tpu.memory_space<vmem>>, vector<32x32xbf16>
    %254 = arith.truncf %252 : vector<32x128xf32> to vector<32x128xbf16>
    %cst_141 = arith.constant dense<0.000000e+00> : vector<32x128xf32>
    %255 = tpu.matmul %253, %254, %cst_141 {dimension_numbers = #tpu.dot_dimension_numbers<[1], [0], [0], [1], [0, 0, 1, 1], [], []>} : vector<32x32xbf16>, vector<32x128xbf16>, vector<32x128xf32> -> vector<32x128xf32>
    %c0_142 = arith.constant 0 : index
    %c11 = arith.constant 11 : index
    %256 = vector.load %arg10[%c0_142, %c11] : memref<96x24xf32, #tpu.memory_space<vmem>>, vector<32x1xf32>
    %257 = vector.broadcast %256 : vector<32x1xf32> to vector<32x128xf32>
    %258 = arith.addf %255, %257 : vector<32x128xf32>
    %c0_143 = arith.constant 0 : index
    %c12 = arith.constant 12 : index
    %259 = vector.load %arg10[%c0_143, %c12] : memref<96x24xf32, #tpu.memory_space<vmem>>, vector<32x1xf32>
    %c0_144 = arith.constant 0 : index
    %c13 = arith.constant 13 : index
    %260 = vector.load %arg10[%c0_144, %c13] : memref<96x24xf32, #tpu.memory_space<vmem>>, vector<32x1xf32>
    %c0_145 = arith.constant 0 : index
    %c0_146 = arith.constant 0 : index
    %261 = vector.load %arg3[%c0_145, %c0_146] : memref<128x128xf32, #tpu.memory_space<vmem>>, vector<128x128xf32>
    %cst_147 = arith.constant dense<0.000000e+00> : vector<32x128xf32>
    %262 = tpu.matmul %258, %261, %cst_147 {dimension_numbers = #tpu.dot_dimension_numbers<[1], [0], [0], [1], [0, 0, 1, 1], [], []>} : vector<32x128xf32>, vector<128x128xf32>, vector<32x128xf32> -> vector<32x128xf32>
    %263 = arith.subf %258, %262 : vector<32x128xf32>
    %264 = arith.mulf %263, %263 : vector<32x128xf32>
    %c0_148 = arith.constant 0 : index
    %c0_149 = arith.constant 0 : index
    %265 = vector.load %arg3[%c0_148, %c0_149] : memref<128x128xf32, #tpu.memory_space<vmem>>, vector<128x128xf32>
    %cst_150 = arith.constant dense<0.000000e+00> : vector<32x128xf32>
    %266 = tpu.matmul %264, %265, %cst_150 {dimension_numbers = #tpu.dot_dimension_numbers<[1], [0], [0], [1], [0, 0, 1, 1], [], []>} : vector<32x128xf32>, vector<128x128xf32>, vector<32x128xf32> -> vector<32x128xf32>
    %cst_151 = arith.constant 9.99999974E-6 : f32
    %267 = vector.broadcast %cst_151 : f32 to vector<32x128xf32>
    %268 = arith.addf %266, %267 : vector<32x128xf32>
    %269 = math.rsqrt %268 : vector<32x128xf32>
    %270 = vector.broadcast %259 : vector<32x1xf32> to vector<32x128xf32>
    %271 = arith.mulf %269, %270 : vector<32x128xf32>
    %272 = arith.mulf %263, %271 : vector<32x128xf32>
    %273 = vector.broadcast %260 : vector<32x1xf32> to vector<32x128xf32>
    %274 = arith.addf %272, %273 : vector<32x128xf32>
    %275 = arith.addf %274, %218 : vector<32x128xf32>
    %cst_152 = arith.constant 0.000000e+00 : f32
    %276 = vector.broadcast %cst_152 : f32 to vector<32x128xf32>
    %277 = arith.cmpf ogt, %275, %276 : vector<32x128xf32>
    %cst_153 = arith.constant 0.00999999977 : f32
    %278 = vector.broadcast %cst_153 : f32 to vector<32x128xf32>
    %279 = arith.mulf %278, %275 : vector<32x128xf32>
    %280 = arith.select %277, %275, %279 : vector<32x128xi1>, vector<32x128xf32>
    %281 = arith.truncf %280 : vector<32x128xf32> to vector<32x128xbf16>
    %c0_154 = arith.constant 0 : index
    %c0_155 = arith.constant 0 : index
    %282 = vector.load %arg8[%c0_154, %c0_155] : memref<48x32xbf16, #tpu.memory_space<vmem>>, vector<16x32xbf16>
    %cst_156 = arith.constant dense<0.000000e+00> : vector<16x128xf32>
    %283 = tpu.matmul %282, %281, %cst_156 {dimension_numbers = #tpu.dot_dimension_numbers<[1], [0], [0], [1], [0, 0, 1, 1], [], []>} : vector<16x32xbf16>, vector<32x128xbf16>, vector<16x128xf32> -> vector<16x128xf32>
    %c0_157 = arith.constant 0 : index
    %c16_158 = arith.constant 16 : index
    %284 = vector.load %arg10[%c0_157, %c16_158] : memref<96x24xf32, #tpu.memory_space<vmem>>, vector<16x1xf32>
    %285 = vector.broadcast %284 : vector<16x1xf32> to vector<16x128xf32>
    %286 = arith.addf %283, %285 : vector<16x128xf32>
    %287 = arith.truncf %286 : vector<16x128xf32> to vector<16x128xbf16>
    %c16_159 = arith.constant 16 : index
    %c0_160 = arith.constant 0 : index
    %288 = vector.load %arg8[%c16_159, %c0_160] : memref<48x32xbf16, #tpu.memory_space<vmem>>, vector<16x32xbf16>
    %cst_161 = arith.constant dense<0.000000e+00> : vector<16x128xf32>
    %289 = tpu.matmul %288, %281, %cst_161 {dimension_numbers = #tpu.dot_dimension_numbers<[1], [0], [0], [1], [0, 0, 1, 1], [], []>} : vector<16x32xbf16>, vector<32x128xbf16>, vector<16x128xf32> -> vector<16x128xf32>
    %c16_162 = arith.constant 16 : index
    %c16_163 = arith.constant 16 : index
    %290 = vector.load %arg10[%c16_162, %c16_163] : memref<96x24xf32, #tpu.memory_space<vmem>>, vector<16x1xf32>
    %291 = vector.broadcast %290 : vector<16x1xf32> to vector<16x128xf32>
    %292 = arith.addf %289, %291 : vector<16x128xf32>
    %293 = arith.truncf %292 : vector<16x128xf32> to vector<16x128xbf16>
    %294 = tpu.concatenate %287, %293 in 1 : vector<16x128xbf16>, vector<16x128xbf16> -> vector<16x256xbf16>
    %c32_164 = arith.constant 32 : index
    %c0_165 = arith.constant 0 : index
    %295 = vector.load %arg8[%c32_164, %c0_165] : memref<48x32xbf16, #tpu.memory_space<vmem>>, vector<16x32xbf16>
    %cst_166 = arith.constant dense<0.000000e+00> : vector<16x128xf32>
    %296 = tpu.matmul %295, %281, %cst_166 {dimension_numbers = #tpu.dot_dimension_numbers<[1], [0], [0], [1], [0, 0, 1, 1], [], []>} : vector<16x32xbf16>, vector<32x128xbf16>, vector<16x128xf32> -> vector<16x128xf32>
    %c32_167 = arith.constant 32 : index
    %c16_168 = arith.constant 16 : index
    %297 = vector.load %arg10[%c32_167, %c16_168] : memref<96x24xf32, #tpu.memory_space<vmem>>, vector<16x1xf32>
    %298 = vector.broadcast %297 : vector<16x1xf32> to vector<16x128xf32>
    %299 = arith.addf %296, %298 : vector<16x128xf32>
    %c0_169 = arith.constant 0 : index
    %c22 = arith.constant 22 : index
    %300 = vector.load %arg10[%c0_169, %c22] : memref<96x24xf32, #tpu.memory_space<vmem>>, vector<16x1xf32>
    %c0_170 = arith.constant 0 : index
    %c23 = arith.constant 23 : index
    %301 = vector.load %arg10[%c0_170, %c23] : memref<96x24xf32, #tpu.memory_space<vmem>>, vector<16x1xf32>
    %c0_171 = arith.constant 0 : index
    %c0_172 = arith.constant 0 : index
    %302 = vector.load %arg3[%c0_171, %c0_172] : memref<128x128xf32, #tpu.memory_space<vmem>>, vector<128x128xf32>
    %cst_173 = arith.constant dense<0.000000e+00> : vector<16x128xf32>
    %303 = tpu.matmul %299, %302, %cst_173 {dimension_numbers = #tpu.dot_dimension_numbers<[1], [0], [0], [1], [0, 0, 1, 1], [], []>} : vector<16x128xf32>, vector<128x128xf32>, vector<16x128xf32> -> vector<16x128xf32>
    %304 = arith.subf %299, %303 : vector<16x128xf32>
    %305 = arith.mulf %304, %304 : vector<16x128xf32>
    %c0_174 = arith.constant 0 : index
    %c0_175 = arith.constant 0 : index
    %306 = vector.load %arg3[%c0_174, %c0_175] : memref<128x128xf32, #tpu.memory_space<vmem>>, vector<128x128xf32>
    %cst_176 = arith.constant dense<0.000000e+00> : vector<16x128xf32>
    %307 = tpu.matmul %305, %306, %cst_176 {dimension_numbers = #tpu.dot_dimension_numbers<[1], [0], [0], [1], [0, 0, 1, 1], [], []>} : vector<16x128xf32>, vector<128x128xf32>, vector<16x128xf32> -> vector<16x128xf32>
    %cst_177 = arith.constant 9.99999974E-6 : f32
    %308 = vector.broadcast %cst_177 : f32 to vector<16x128xf32>
    %309 = arith.addf %307, %308 : vector<16x128xf32>
    %310 = math.rsqrt %309 : vector<16x128xf32>
    %311 = vector.broadcast %300 : vector<16x1xf32> to vector<16x128xf32>
    %312 = arith.mulf %310, %311 : vector<16x128xf32>
    %313 = arith.mulf %304, %312 : vector<16x128xf32>
    %314 = vector.broadcast %301 : vector<16x1xf32> to vector<16x128xf32>
    %315 = arith.addf %313, %314 : vector<16x128xf32>
    %c0_178 = arith.constant 0 : index
    %c0_179 = arith.constant 0 : index
    %316 = vector.load %arg12[%c0_178, %c0_179] : memref<256x128xbf16, #tpu.memory_space<vmem>>, vector<256x128xbf16>
    %cst_180 = arith.constant dense<0.000000e+00> : vector<16x128xf32>
    %317 = tpu.matmul %294, %316, %cst_180 {dimension_numbers = #tpu.dot_dimension_numbers<[1], [0], [0], [1], [0, 0, 1, 1], [], []>} : vector<16x256xbf16>, vector<256x128xbf16>, vector<16x128xf32> -> vector<16x128xf32>
    %c0_181 = arith.constant 0 : index
    %c17 = arith.constant 17 : index
    %318 = vector.load %arg10[%c0_181, %c17] : memref<96x24xf32, #tpu.memory_space<vmem>>, vector<16x1xf32>
    %c0_182 = arith.constant 0 : index
    %c18 = arith.constant 18 : index
    %319 = vector.load %arg10[%c0_182, %c18] : memref<96x24xf32, #tpu.memory_space<vmem>>, vector<16x1xf32>
    %c0_183 = arith.constant 0 : index
    %c0_184 = arith.constant 0 : index
    %320 = vector.load %arg3[%c0_183, %c0_184] : memref<128x128xf32, #tpu.memory_space<vmem>>, vector<128x128xf32>
    %cst_185 = arith.constant dense<0.000000e+00> : vector<16x128xf32>
    %321 = tpu.matmul %317, %320, %cst_185 {dimension_numbers = #tpu.dot_dimension_numbers<[1], [0], [0], [1], [0, 0, 1, 1], [], []>} : vector<16x128xf32>, vector<128x128xf32>, vector<16x128xf32> -> vector<16x128xf32>
    %322 = arith.subf %317, %321 : vector<16x128xf32>
    %323 = arith.mulf %322, %322 : vector<16x128xf32>
    %c0_186 = arith.constant 0 : index
    %c0_187 = arith.constant 0 : index
    %324 = vector.load %arg3[%c0_186, %c0_187] : memref<128x128xf32, #tpu.memory_space<vmem>>, vector<128x128xf32>
    %cst_188 = arith.constant dense<0.000000e+00> : vector<16x128xf32>
    %325 = tpu.matmul %323, %324, %cst_188 {dimension_numbers = #tpu.dot_dimension_numbers<[1], [0], [0], [1], [0, 0, 1, 1], [], []>} : vector<16x128xf32>, vector<128x128xf32>, vector<16x128xf32> -> vector<16x128xf32>
    %cst_189 = arith.constant 9.99999974E-6 : f32
    %326 = vector.broadcast %cst_189 : f32 to vector<16x128xf32>
    %327 = arith.addf %325, %326 : vector<16x128xf32>
    %328 = math.rsqrt %327 : vector<16x128xf32>
    %329 = vector.broadcast %318 : vector<16x1xf32> to vector<16x128xf32>
    %330 = arith.mulf %328, %329 : vector<16x128xf32>
    %331 = arith.mulf %322, %330 : vector<16x128xf32>
    %332 = vector.broadcast %319 : vector<16x1xf32> to vector<16x128xf32>
    %333 = arith.addf %331, %332 : vector<16x128xf32>
    %cst_190 = arith.constant 0.000000e+00 : f32
    %334 = vector.broadcast %cst_190 : f32 to vector<16x128xf32>
    %335 = arith.maximumf %333, %334 : vector<16x128xf32>
    %c0_191 = arith.constant 0 : index
    %c0_192 = arith.constant 0 : index
    %336 = vector.load %arg9[%c0_191, %c0_192] : memref<16x16xbf16, #tpu.memory_space<vmem>>, vector<16x16xbf16>
    %337 = arith.truncf %335 : vector<16x128xf32> to vector<16x128xbf16>
    %cst_193 = arith.constant dense<0.000000e+00> : vector<16x128xf32>
    %338 = tpu.matmul %336, %337, %cst_193 {dimension_numbers = #tpu.dot_dimension_numbers<[1], [0], [0], [1], [0, 0, 1, 1], [], []>} : vector<16x16xbf16>, vector<16x128xbf16>, vector<16x128xf32> -> vector<16x128xf32>
    %c0_194 = arith.constant 0 : index
    %c19 = arith.constant 19 : index
    %339 = vector.load %arg10[%c0_194, %c19] : memref<96x24xf32, #tpu.memory_space<vmem>>, vector<16x1xf32>
    %340 = vector.broadcast %339 : vector<16x1xf32> to vector<16x128xf32>
    %341 = arith.addf %338, %340 : vector<16x128xf32>
    %c0_195 = arith.constant 0 : index
    %c20 = arith.constant 20 : index
    %342 = vector.load %arg10[%c0_195, %c20] : memref<96x24xf32, #tpu.memory_space<vmem>>, vector<16x1xf32>
    %c0_196 = arith.constant 0 : index
    %c21 = arith.constant 21 : index
    %343 = vector.load %arg10[%c0_196, %c21] : memref<96x24xf32, #tpu.memory_space<vmem>>, vector<16x1xf32>
    %c0_197 = arith.constant 0 : index
    %c0_198 = arith.constant 0 : index
    %344 = vector.load %arg3[%c0_197, %c0_198] : memref<128x128xf32, #tpu.memory_space<vmem>>, vector<128x128xf32>
    %cst_199 = arith.constant dense<0.000000e+00> : vector<16x128xf32>
    %345 = tpu.matmul %341, %344, %cst_199 {dimension_numbers = #tpu.dot_dimension_numbers<[1], [0], [0], [1], [0, 0, 1, 1], [], []>} : vector<16x128xf32>, vector<128x128xf32>, vector<16x128xf32> -> vector<16x128xf32>
    %346 = arith.subf %341, %345 : vector<16x128xf32>
    %347 = arith.mulf %346, %346 : vector<16x128xf32>
    %c0_200 = arith.constant 0 : index
    %c0_201 = arith.constant 0 : index
    %348 = vector.load %arg3[%c0_200, %c0_201] : memref<128x128xf32, #tpu.memory_space<vmem>>, vector<128x128xf32>
    %cst_202 = arith.constant dense<0.000000e+00> : vector<16x128xf32>
    %349 = tpu.matmul %347, %348, %cst_202 {dimension_numbers = #tpu.dot_dimension_numbers<[1], [0], [0], [1], [0, 0, 1, 1], [], []>} : vector<16x128xf32>, vector<128x128xf32>, vector<16x128xf32> -> vector<16x128xf32>
    %cst_203 = arith.constant 9.99999974E-6 : f32
    %350 = vector.broadcast %cst_203 : f32 to vector<16x128xf32>
    %351 = arith.addf %349, %350 : vector<16x128xf32>
    %352 = math.rsqrt %351 : vector<16x128xf32>
    %353 = vector.broadcast %342 : vector<16x1xf32> to vector<16x128xf32>
    %354 = arith.mulf %352, %353 : vector<16x128xf32>
    %355 = arith.mulf %346, %354 : vector<16x128xf32>
    %356 = vector.broadcast %343 : vector<16x1xf32> to vector<16x128xf32>
    %357 = arith.addf %355, %356 : vector<16x128xf32>
    %358 = arith.addf %357, %315 : vector<16x128xf32>
    %c0_204 = arith.constant 0 : index
    %c0_205 = arith.constant 0 : index
    %c0_206 = arith.constant 0 : index
    %359 = vector.load %arg11[%c0_204, %c0_205, %c0_206] : memref<1x16x128xf32, #tpu.memory_space<vmem>>, vector<1x16x128xf32>
    %360 = vector.shape_cast %359 : vector<1x16x128xf32> to vector<16x128xf32>
    %361 = vector.shape_cast %358 : vector<16x128xf32> to vector<1x16x128xf32>
    tpu.vector_store %arg11[%c0_204, %c0_205, %c0_206], %361 {strides = array<i32>} : memref<1x16x128xf32, #tpu.memory_space<vmem>>, vector<1x16x128xf32>,
    return
  }
  func.func @transform_0(%arg0: i32) -> (i32, i32, i32) {
    %c0_i32 = arith.constant 0 : i32
    %c0_i32_0 = arith.constant 0 : i32
    %c0_i32_1 = arith.constant 0 : i32
    return %arg0, %c0_i32, %c0_i32_0 : i32, i32, i32
  }
  func.func @transform_1(%arg0: i32) -> (i32, i32, i32, i32) {
    %c0_i32 = arith.constant 0 : i32
    %c0_i32_0 = arith.constant 0 : i32
    %c0_i32_1 = arith.constant 0 : i32
    %c0_i32_2 = arith.constant 0 : i32
    return %arg0, %c0_i32, %c0_i32_0, %c0_i32_1 : i32, i32, i32, i32
  }
  func.func @transform_2(%arg0: i32) -> (i32, i32) {
    %c0_i32 = arith.constant 0 : i32
    %c0_i32_0 = arith.constant 0 : i32
    %c0_i32_1 = arith.constant 0 : i32
    return %c0_i32, %c0_i32_0 : i32, i32
  }
  func.func @transform_3(%arg0: i32) -> (i32, i32) {
    %c0_i32 = arith.constant 0 : i32
    %c0_i32_0 = arith.constant 0 : i32
    %c0_i32_1 = arith.constant 0 : i32
    return %c0_i32, %c0_i32_0 : i32, i32
  }
  func.func @transform_4(%arg0: i32) -> (i32, i32) {
    %c0_i32 = arith.constant 0 : i32
    %c0_i32_0 = arith.constant 0 : i32
    %c0_i32_1 = arith.constant 0 : i32
    return %c0_i32, %c0_i32_0 : i32, i32
  }
  func.func @transform_5(%arg0: i32) -> (i32, i32) {
    %c0_i32 = arith.constant 0 : i32
    %c0_i32_0 = arith.constant 0 : i32
    %c0_i32_1 = arith.constant 0 : i32
    return %c0_i32, %c0_i32_0 : i32, i32
  }
  func.func @transform_6(%arg0: i32) -> (i32, i32) {
    %c0_i32 = arith.constant 0 : i32
    %c0_i32_0 = arith.constant 0 : i32
    %c0_i32_1 = arith.constant 0 : i32
    return %c0_i32, %c0_i32_0 : i32, i32
  }
  func.func @transform_7(%arg0: i32) -> (i32, i32) {
    %c0_i32 = arith.constant 0 : i32
    %c0_i32_0 = arith.constant 0 : i32
    %c0_i32_1 = arith.constant 0 : i32
    return %c0_i32, %c0_i32_0 : i32, i32
  }
  func.func @transform_8(%arg0: i32) -> (i32, i32) {
    %c0_i32 = arith.constant 0 : i32
    %c0_i32_0 = arith.constant 0 : i32
    %c0_i32_1 = arith.constant 0 : i32
    return %c0_i32, %c0_i32_0 : i32, i32
  }
  func.func @transform_9(%arg0: i32) -> (i32, i32) {
    %c0_i32 = arith.constant 0 : i32
    %c0_i32_0 = arith.constant 0 : i32
    %c0_i32_1 = arith.constant 0 : i32
    return %c0_i32, %c0_i32_0 : i32, i32
  }
  func.func @transform_10(%arg0: i32) -> (i32, i32, i32) {
    %c0_i32 = arith.constant 0 : i32
    %c0_i32_0 = arith.constant 0 : i32
    %c0_i32_1 = arith.constant 0 : i32
    return %arg0, %c0_i32, %c0_i32_0 : i32, i32, i32
  }
}

</mosaic_0001>

<bundles_post_ra>
// kernel: tpu_custom_call.1
= control target key start
LH: loop header
LB: loop body
LE: loop exit
PB: predicated region body
PF: predicated region fallthrough
CT: control target
= control target key end

     0   :  { %vm266_vm0 = vcmask 1043456   ;;  %vm259_vm1 = vcmask 64512   ;;  %v4841_v5 = vmov 0   ;;  %s5858_s0 = inlined_call_operand.vmem [shape: bf16[1,8,128], index: 0, kind: input, shape index: {}]   ;;  %s5859_s1 = inlined_call_operand.vmem [shape: bf16[1,2,16,128], index: 1, kind: input, shape index: {}]   ;;  %s5860_s2 = inlined_call_operand.vmem [shape: f32[128,128], index: 2, kind: input, shape index: {}]   ;;  %s5861_s3 = inlined_call_operand.vmem [shape: bf16[96,8], index: 3, kind: input, shape index: {}]   ;;  %s5862_s4 = inlined_call_operand.vmem [shape: bf16[32,32], index: 4, kind: input, shape index: {}]   ;;  %s5863_s5 = inlined_call_operand.vmem [shape: bf16[64,32], index: 5, kind: input, shape index: {}]   ;;  %s5864_s6 = inlined_call_operand.vmem [shape: bf16[32,32], index: 6, kind: input, shape index: {}]   ;;  %s5865_s7 = inlined_call_operand.vmem [shape: bf16[48,32], index: 7, kind: input, shape index: {}]   ;;  %s5866_s8 = inlined_call_operand.vmem [shape: bf16[16,16], index: 8, kind: input, shape index: {}]   ;;  %s5867_s9 = inlined_call_operand.vmem [shape: f32[96,24], index: 9, kind: input, shape index: {}]   ;;  %s5868_s10 = inlined_call_operand.hbm [shape: f32[1,16,128], index: 10, kind: output, shape index: {}]  }
   0x1   :  { %v220_v0 = vld [vmem:[%s5858_s0] sm:$0xf]  ;;  %v4742_v3 = vld [vmem:[%s5861_s3 + $0x8] sm:$0xff]   ;;  %v4743_v4 = vld [vmem:[%s5861_s3 + $0x10] sm:$0xff]   ;;  %4695 = vset.pattern.permute.xlu0 %v4841_v5  ;;  %4696 = vset.pattern.permute.xlu1 %v4841_v5 }
   0x2   :  { %v4741_v1 = vld [vmem:[%s5861_s3] sm:$0xff]   ;;  %4665 = vmatprep.subr.msk.bf16.mxu1 %vm266_vm0, %v220_v0  ;;  %v268_v2 = vsel %vm266_vm0, %v220_v0, 0  ;;  %v422_v7 = vld [vmem:[%s5867_s9 + $0x50] sm:$0xff]  ;;  %v421_v8 = vld [vmem:[%s5867_s9 + $0x48] sm:$0xff] }
   0x3   :  { %3484 = vmatpush3.bf16.msra.mxu1 %v268_v2  ;;  %3485 = vmatprep.mubr.msk.bf16.mxu1 %vm259_vm1, %v4741_v1  ;;  %v420_v6 = vld [vmem:[%s5867_s9 + $0x40] sm:$0xff]  ;;  %v4744_v9 = vld [vmem:[%s5861_s3 + $0x18] sm:$0xff]   ;;  %v326_v13 = vld [vmem:[%s5867_s9 + $0x28] sm:$0xff] }
   0x4   :  { %4666 = vmatprep.subr.msk.bf16.mxu1 %vm266_vm0, %v220_v0  ;;  %426 = vperm.xlu0 %4695, %v420_v6   ;;  %v423_v10 = vld [vmem:[%s5867_s9 + $0x58] sm:$0xff]  ;;  %v4745_v11 = vld [vmem:[%s5861_s3 + $0x20] sm:$0xff]   ;;  %v510_v16 = vld [vmem:[%s5860_s2 + $0x8] sm:$0xff] }
   0x5   :  { %436 = vperm.xlu1 %4696, %v422_v7   ;;  %v325_v12 = vld [vmem:[%s5867_s9 + $0x20] sm:$0xff]  ;;  %v4746_v17 = vld [vmem:[%s5861_s3 + $0x28] sm:$0xff]   ;;  %v511_v20 = vld [vmem:[%s5860_s2 + $0x10] sm:$0xff] }
   0x6   :  { %3486 = vmatmul.mubr.msk.bf16.vlgmr.msra.gmra.mrb[0].mxu1 %vm259_vm1, %v4742_v3  ;;  %v4971_v14 = vld [vmem:[%s5867_s9] sm:$0xff]  ;;  %v4985_v18 = vld [vmem:[%s5867_s9 + $0x8] sm:$0xff]  ;;  %v512_v21 = vld [vmem:[%s5860_s2 + $0x18] sm:$0xff] }
   0x7   :  { %3490 = vmatpush3.bf16.msra.mxu1 %v268_v2  ;;  %3491 = vmatprep.mubr.msk.bf16.mxu1 %vm259_vm1, %v4743_v4  ;;  %v509_v15 = vld [vmem:[%s5860_s2] sm:$0xff]  ;;  %v4999_v22 = vpack.c.bf16 %v512_v21, %v511_v20  ;;  %v5005_v23 = vld [vmem:[%s5867_s9 + $0x30] sm:$0xff] }
   0x8   :  { %4667 = vmatprep.subr.msk.bf16.mxu1 %vm266_vm0, %v220_v0  ;;  %431 = vperm.xlu0 %4695, %v421_v8   ;;  %v4987_v19 = vpack.c.bf16 %v510_v16, %v509_v15 }
   0x9   :  { %441 = vperm.xlu1 %4696, %v423_v10  }
   0xa   :  { %4186 = vmatprep.subr.bf16.mxu0 %v4987_v19 }
   0xb   :  { %4188 = vmatpush3.bf16.msra.mxu0 %v4987_v19 }
   0xc   :  { %331 = vperm.xlu0 %4695, %v325_v12  }
   0xd   :  { %336 = vperm.xlu1 %4696, %v326_v13  }
   0xe   :  { %3492 = vmatmul.mubr.msk.bf16.vlgmr.msra.gmra.mrb[4].mxu1 %vm259_vm1, %v4744_v9 }
   0xf   :  { %3496 = vmatpush3.bf16.msra.mxu1 %v268_v2  ;;  %3497 = vmatprep.mubr.msk.bf16.mxu1 %vm259_vm1, %v4745_v11 }
  0x10   :  { %4154 = vmatprep.subr.bf16.mxu1 %v4987_v19  ;;  %231 = vperm.xlu0 %4695, %v4971_v14  }
  0x11   :  { %236 = vperm.xlu1 %4696, %v4985_v18  }
  0x12   :  { %15 = vsyncpa [#allocation4], 0  ;;  %v5011_v24 = vld [vmem:[%s5867_s9 + $0x38] sm:$0xff]  ;;  %4190 = vmatprep.subr.bf16.mxu0 %v4999_v22  ;;  %v513_v25 = vld [vmem:[%s5860_s2 + $0x20] sm:$0xff]  ;;  %v37_v42 = vlaneseq  ;;  %v4842_v9 = vmov 1   ;;  %v4843_v13 = vmov 2  }
  0x13   :  { %v514_v26 = vld [vmem:[%s5860_s2 + $0x28] sm:$0xff]  ;;  %4192 = vmatpush3.bf16.msra.mxu0 %v4999_v22  ;;  %v5030_v28 = vld [vmem:[%s5867_s9 + $0x10] sm:$0xff]  ;;  %v5035_v29 = vld [vmem:[%s5867_s9 + $0x18] sm:$0xff] }
  0x14   :  { %341 = vperm.xlu0 %4695, %v5005_v23   ;;  %v5024_v27 = vpack.c.bf16 %v514_v26, %v513_v25  ;;  %v515_v30 = vld [vmem:[%s5860_s2 + $0x30] sm:$0xff]  ;;  %v516_v31 = vld [vmem:[%s5860_s2 + $0x38] sm:$0xff]  ;;  %v517_v33 = vld [vmem:[%s5860_s2 + $0x40] sm:$0xff]  ;;  %v38_v45 = vand.u32 127, %v37_v42 }
  0x15   :  { %346 = vperm.xlu1 %4696, %v5011_v24   ;;  %v5050_v32 = vpack.c.bf16 %v516_v31, %v515_v30  ;;  %v518_v34 = vld [vmem:[%s5860_s2 + $0x48] sm:$0xff]  ;;  %v519_v36 = vld [vmem:[%s5860_s2 + $0x50] sm:$0xff]  ;;  %v520_v37 = vld [vmem:[%s5860_s2 + $0x58] sm:$0xff] }
  0x16   :  { %3498 = vmatmul.mubr.msk.bf16.vlgmr.msra.gmra.mrb[8].mxu1 %vm259_vm1, %v4746_v17  ;;  %4194 = vmatprep.subr.bf16.mxu0 %v5024_v27  ;;  %v5062_v35 = vpack.c.bf16 %v518_v34, %v517_v33  ;;  %v5074_v38 = vpack.c.bf16 %v520_v37, %v519_v36  ;;  %v521_v39 = vld [vmem:[%s5860_s2 + $0x60] sm:$0xff]  ;;  %v522_v40 = vld [vmem:[%s5860_s2 + $0x68] sm:$0xff]  ;;  %v523_v43 = vld [vmem:[%s5860_s2 + $0x70] sm:$0xff]  ;;  %vm42_vm2 = vcmp.lt.s32.totalorder %v38_v45, 16  ;;  %vm54_vm4 = vcmp.ge.s32.totalorder %v38_v45, 16 }
  0x17   :  { %4156 = vmatpush3.bf16.msra.mxu1 %v4987_v19  ;;  %4196 = vmatpush3.bf16.msra.mxu0 %v5024_v27  ;;  %v5086_v41 = vpack.c.bf16 %v522_v40, %v521_v39  ;;  %v524_v44 = vld [vmem:[%s5860_s2 + $0x78] sm:$0xff]  ;;  %vm5101_vm3 = vmpackc.low %vm42_vm2, %vm42_vm2  ;;  %v3015_v48 = vld [vmem:[%s5859_s1 + $0x8] sm:$0xf]  ;;  %vm55_vm5 = vcmp.lt.s32.totalorder %v38_v45, 32  ;;  %vm67_vm8 = vcmp.ge.s32.totalorder %v38_v45, 32  ;;  %vm68_vm9 = vcmp.lt.s32.totalorder %v38_v45, 48 }
  0x18   :  { %4158 = vmatprep.subr.bf16.mxu1 %v4999_v22  ;;  %241 = vperm.xlu0 %4695, %v5030_v28   ;;  %v5098_v46 = vpack.c.bf16 %v524_v44, %v523_v43  ;;  %v3016_v49 = vld [vmem:[%s5859_s1 + $0xc] sm:$0xf]  ;;  %v148_v50 = vsel %vm5101_vm3, %v3015_v48, 0  ;;  %vm56_vm6 = vmand %vm54_vm4, %vm55_vm5  ;;  %vm80_vm12 = vcmp.ge.s32.totalorder %v38_v45, 48  ;;  %vm81_vm13 = vcmp.lt.s32.totalorder %v38_v45, 64 }
  0x19   :  { %246 = vperm.xlu1 %4696, %v5035_v29   ;;  %4198 = vmatprep.subr.bf16.mxu0 %v5050_v32  ;;  %v149_v51 = vsel %vm5101_vm3, %v3016_v49, 0  ;;  %vm5122_vm7 = vmpackc.low %vm56_vm6, %vm56_vm6  ;;  %vm93_vm0 = vcmp.ge.s32.totalorder %v38_v45, 64  ;;  %vm94_vm1 = vcmp.lt.s32.totalorder %v38_v45, 80  ;;  %vm106_vm5 = vcmp.ge.s32.totalorder %v38_v45, 80 }
  0x1a   :  { %v5118_v52 = vcombine.low %v148_v50, %v149_v51  ;;  %v157_v54 = vsel %vm5122_vm7, %v3015_v48, 0  ;;  %v158_v55 = vsel %vm5122_vm7, %v3016_v49, 0  ;;  %vm69_vm10 = vmand %vm67_vm8, %vm68_vm9  ;;  %vm107_vm6 = vcmp.lt.s32.totalorder %v38_v45, 96 }
  0x1b   :  { %4160 = vmatpush3.bf16.msra.mxu1 %v4999_v22  ;;  %4200 = vmatpush3.bf16.msra.mxu0 %v5050_v32  ;;  %v5130_v56 = vcombine.low %v157_v54, %v158_v55  ;;  %vm5132_vm11 = vmpackc.low %vm69_vm10, %vm69_vm10  ;;  %vm119_vm10 = vcmp.ge.s32.totalorder %v38_v45, 96 }
  0x1c   :  { %4162 = vmatprep.subr.bf16.mxu1 %v5024_v27  ;;  %4202 = vmatprep.subr.bf16.mxu0 %v5062_v35  ;;  %v166_v58 = vsel %vm5132_vm11, %v3015_v48, 0  ;;  %v167_v59 = vsel %vm5132_vm11, %v3016_v49, 0  ;;  %vm82_vm14 = vmand %vm80_vm12, %vm81_vm13  ;;  %vm120_vm12 = vcmp.lt.s32.totalorder %v38_v45, 112 }
  0x1d   :  { %v5140_v60 = vcombine.low %v166_v58, %v167_v59  ;;  %vm5142_vm15 = vmpackc.low %vm82_vm14, %vm82_vm14  ;;  %4698 = vset.pattern.permute.xlu1 %v4842_v9  ;;  %4697 = vset.pattern.permute.xlu0 %v4842_v9 }
  0x1e   :  { %v175_v62 = vsel %vm5142_vm15, %v3015_v48, 0  ;;  %v176_v63 = vsel %vm5142_vm15, %v3016_v49, 0  ;;  %vm95_vm2 = vmand %vm93_vm0, %vm94_vm1  ;;  %vm132_vm0 = vcmp.ge.s32.totalorder %v38_v45, 112  ;;  %1003 = vperm.xlu1 %4698, %v4985_v18   ;;  %999 = vperm.xlu0 %4697, %v4971_v14  }
  0x1f   :  { %4164 = vmatpush3.bf16.msra.mxu1 %v5024_v27  ;;  %4204 = vmatpush3.bf16.msra.mxu0 %v5062_v35  ;;  %v5150_v0 = vcombine.low %v175_v62, %v176_v63  ;;  %vm5152_vm4 = vmpackc.low %vm95_vm2, %vm95_vm2 }
  0x20   :  { %4166 = vmatprep.subr.bf16.mxu1 %v5050_v32  ;;  %4206 = vmatprep.subr.bf16.mxu0 %v5074_v38  ;;  %v184_v2 = vsel %vm5152_vm4, %v3015_v48, 0  ;;  %v185_v3 = vsel %vm5152_vm4, %v3016_v49, 0  ;;  %vm108_vm8 = vmand %vm106_vm5, %vm107_vm6 }
  0x21   :  { %v5160_v4 = vcombine.low %v184_v2, %v185_v3  ;;  %vm5162_vm9 = vmpackc.low %vm108_vm8, %vm108_vm8 }
  0x22   :  { %v193_v6 = vsel %vm5162_vm9, %v3015_v48, 0  ;;  %v194_v7 = vsel %vm5162_vm9, %v3016_v49, 0  ;;  %vm121_vm13 = vmand %vm119_vm10, %vm120_vm12  ;;  %1007 = vperm.xlu1 %4698, %v5030_v28   ;;  %1011 = vperm.xlu0 %4697, %v5035_v29   ;;  %vm2764_vm10 = vcmask 130048  }
  0x23   :  { %4168 = vmatpush3.bf16.msra.mxu1 %v5050_v32  ;;  %4208 = vmatpush3.bf16.msra.mxu0 %v5074_v38  ;;  %v5170_v8 = vcombine.low %v193_v6, %v194_v7  ;;  %vm5172_vm14 = vmpackc.low %vm121_vm13, %vm121_vm13 }
  0x24   :  { %4170 = vmatprep.subr.bf16.mxu1 %v5062_v35  ;;  %4210 = vmatprep.subr.bf16.mxu0 %v5086_v41  ;;  %v202_v10 = vsel %vm5172_vm14, %v3015_v48, 0  ;;  %v203_v11 = vsel %vm5172_vm14, %v3016_v49, 0  ;;  %vm5182_vm1 = vmpackc.low %vm132_vm0, %vm132_vm0 }
  0x25   :  { %v5180_v12 = vcombine.low %v202_v10, %v203_v11  ;;  %v211_v15 = vsel %vm5182_vm1, %v3015_v48, 0  ;;  %v212_v16 = vsel %vm5182_vm1, %v3016_v49, 0  ;;  %v39_v11 = vld [vmem:[%s5859_s1] sm:$0xf] }
  0x26   :  { %v5190_v17 = vcombine.low %v211_v15, %v212_v16  ;;  %v40_v15 = vld [vmem:[%s5859_s1 + $0x4] sm:$0xf]  ;;  %v97_v57 = vsel %vm5152_vm4, %v39_v11, 0  ;;  %v110_v61 = vsel %vm5162_vm9, %v39_v11, 0  ;;  %v123_v1 = vsel %vm5172_vm14, %v39_v11, 0  ;;  %4699 = vset.pattern.permute.xlu1 %v4843_v13  ;;  %4700 = vset.pattern.permute.xlu0 %v4843_v13 }
  0x27   :  { %4172 = vmatpush3.bf16.msra.mxu1 %v5062_v35  ;;  %4212 = vmatpush3.bf16.msra.mxu0 %v5086_v41  ;;  %5891 = vst [vmem:[#allocation6_spill] sm:$0xff] %v5180_v12  ;;  %v72_v53 = vsel %vm5132_vm11, %v40_v15, 0  ;;  %v136_v5 = vsel %vm5182_vm1, %v39_v11, 0 }
  0x28   :  { %4174 = vmatprep.subr.bf16.mxu1 %v5074_v38  ;;  %4214 = vmatprep.subr.bf16.mxu0 %v5098_v46  ;;  %5894 = vst [vmem:[#allocation7_spill] sm:$0xff] %v5190_v17 }
  0x29   :  { %1023 = vperm.xlu1 %4699, %v4971_v14   ;;  %1027 = vperm.xlu0 %4700, %v4985_v18  }
  0x2b   :  { %4176 = vmatpush3.bf16.msra.mxu1 %v5074_v38  ;;  %4216 = vmatpush3.bf16.msra.mxu0 %v5098_v46 }
  0x2c   :  { %4178 = vmatprep.subr.bf16.mxu1 %v5086_v41  ;;  %4218 = vmatprep.subr.bf16.mxu0 %v4987_v19 }
  0x2d   :  { %1031 = vperm.xlu1 %4699, %v5030_v28  }
  0x2f   :  { %4180 = vmatpush3.bf16.msra.mxu1 %v5086_v41 }
  0x30   :  { %4182 = vmatprep.subr.bf16.mxu1 %v5098_v46 }
  0x31   :  { %1035 = vperm.xlu1 %4699, %v5035_v29  }
  0x33   :  { %4184 = vmatpush3.bf16.msra.mxu1 %v5098_v46 }
  0x34   :  { %3110 = vmatprep.subr.bf16.mxu1 %v5118_v52 }
  0x83   :  { %v427_v20 = vpop.permute.xlu0 %426 }
  0x84   :  { %v437_v21 = vpop.permute.xlu1 %436 }
  0x87   :  { %v432_v25 = vpop.permute.xlu0 %431 }
  0x88   :  { %v442_v26 = vpop.permute.xlu1 %441 }
  0x8b   :  { %v332_v30 = vpop.permute.xlu0 %331 }
  0x8c   :  { %v337_v31 = vpop.permute.xlu1 %336 }
  0x8f   :  { %v232_v33 = vpop.permute.xlu0 %231 }
  0x90   :  { %v237_v34 = vpop.permute.xlu1 %236 }
  0x93   :  { %v342_v36 = vpop.permute.xlu0 %341 }
  0x94   :  { %v347_v37 = vpop.permute.xlu1 %346 }
  0x97   :  { %v242_v39 = vpop.permute.xlu0 %241 }
  0x98   :  { %v247_v42 = vpop.permute.xlu1 %246 }
  0xd9   :  { %v3487_v40 = vpop.f32.mrb[0].mxu1 }
  0xda   :  { %v304_v43 = vpop.f32.mrb[1].mxu1  ;;  %v5192_v45 = vadd.f32 %v3487_v40, %v242_v39 }
  0xdb   :  { %v3488_v44 = vpop.f32.mrb[2].mxu1  ;;  %v5196_v50 = vadd.f32 %v304_v43, %v232_v33  ;;  %v58_v43 = vsel %vm5122_vm7, %v39_v11, 0 }
  0xdc   :  { %v5194_v48 = vadd.f32 %v3488_v44, %v247_v42  ;;  %v307_v49 = vpop.f32.mrb[3].mxu1  ;;  %v59_v44 = vsel %vm5122_vm7, %v40_v15, 0 }
  0xdd   :  { %v5198_v51 = vadd.f32 %v307_v49, %v237_v34  ;;  %v45_v34 = vsel %vm5101_vm3, %v39_v11, 0  ;;  %v5233_v47 = vcombine.low %v58_v43, %v59_v44 }
  0xde   :  { %v320_v54 = vpack.c.bf16 %v5194_v48, %v5192_v45  ;;  %v4844_v45 = vmov 3   ;;  %v4845_v48 = vmov 6  }
  0xdf   :  { %v319_v55 = vpack.c.bf16 %v5198_v51, %v5196_v50  ;;  %4701 = vset.pattern.permute.xlu0 %v4844_v45  ;;  %4702 = vset.pattern.permute.xlu1 %v4844_v45  ;;  %v4846_v50 = vmov 4   ;;  %v4847_v51 = vmov 7  }
  0xe0   :  { %1053 = vperm.xlu0 %4701, %v4971_v14   ;;  %1057 = vperm.xlu1 %4702, %v4985_v18  }
  0xe1   :  { %v3493_v58 = vpop.f32.mrb[4].mxu1 }
  0xe2   :  { %v399_v59 = vpop.f32.mrb[5].mxu1  ;;  %v5204_v63 = vadd.f32 %v3493_v58, %v342_v36  ;;  %v46_v36 = vsel %vm5101_vm3, %v40_v15, 0  ;;  %v85_v58 = vsel %vm5142_vm15, %v40_v15, 0  ;;  %vm1078_vm3 = vcmask 261120  }
  0xe3   :  { %v3494_v62 = vpop.f32.mrb[6].mxu1  ;;  %v400_v6 = vadd.f32 %v399_v59, %v332_v30  ;;  %v5219_v40 = vcombine.low %v45_v34, %v46_v36 }
  0xe4   :  { %v411_v2 = vadd.f32 %v3494_v62, %v347_v37  ;;  %v402_v3 = vpop.f32.mrb[7].mxu1  ;;  %v98_v62 = vsel %vm5152_vm4, %v40_v15, 0  ;;  %1065 = vperm.xlu0 %4701, %v5035_v29   ;;  %1061 = vperm.xlu1 %4702, %v5030_v28   ;;  %vm4856_vm4 = vmmov 0  }
  0xe5   :  { %v403_v7 = vadd.f32 %v402_v3, %v337_v31 }
  0xe6   :  { %v415_v10 = vpack.c.bf16 %v411_v2, %v5204_v63  ;;  %v5260_v63 = vcombine.low %v97_v57, %v98_v62  ;;  %v111_v2 = vsel %vm5162_vm9, %v40_v15, 0 }
  0xe7   :  { %v414_v16 = vpack.c.bf16 %v403_v7, %v400_v6  ;;  %v5268_v3 = vcombine.low %v110_v61, %v111_v2  ;;  %v124_v6 = vsel %vm5172_vm14, %v40_v15, 0 }
  0xe8   :  { %v5276_v7 = vcombine.low %v123_v1, %v124_v6  ;;  %4704 = vset.pattern.permute.xlu0 %v4845_v48  ;;  %4703 = vset.pattern.permute.xlu1 %v4845_v48 }
  0xe9   :  { %v3499_v33 = vpop.f32.mrb[8].mxu1  ;;  %712 = vperm.xlu0 %4704, %v4985_v18   ;;  %708 = vperm.xlu1 %4703, %v4971_v14  }
  0xea   :  { %v494_v30 = vpop.f32.mrb[9].mxu1  ;;  %v5228_v49 = vadd.f32 %v3499_v33, %v437_v21  ;;  %5895 = vst [vmem:[#allocation8_spill] sm:$0xff] %v5276_v7 }
  0xeb   :  { %v5217_v31 = vadd.f32 %v494_v30, %v427_v20  ;;  %v3500_v37 = vpop.f32.mrb[10].mxu1 }
  0xec   :  { %v497_v39 = vpop.f32.mrb[11].mxu1  ;;  %v5235_v20 = vadd.f32 %v3500_v37, %v442_v26  ;;  %v84_v26 = vsel %vm5142_vm15, %v39_v11, 0 }
  0xed   :  { %v5221_v42 = vadd.f32 %v497_v39, %v432_v25  ;;  %3533 = vmatprep.mubr.f32.mxu1 %v5217_v31  ;;  %v71_v25 = vsel %vm5132_vm11, %v39_v11, 0  ;;  %v5252_v59 = vcombine.low %v84_v26, %v85_v58  ;;  %716 = vperm.xlu0 %4704, %v5030_v28  }
  0xee   :  { %v5244_v21 = vcombine.low %v71_v25, %v72_v53  ;;  %4705 = vset.pattern.permute.xlu1 %v4846_v50 }
  0xef   :  { %3534 = vmatmul.mubr.f32.vlgmr.msra.gmra.mrb[12].mxu1 %v5221_v42  ;;  %1317 = vperm.xlu1 %4705, %v4971_v14  }
  0xf0   :  { %3111 = vmatpush3.bf16.msra.mxu1 %v5219_v40  ;;  %3536 = vmatprep.mubr.f32.mxu1 %v5228_v49 }
  0xf1   :  { %3112 = vmatprep.subr.bf16.mxu1 %v5130_v56  ;;  %4709 = vset.pattern.permute.xlu0 %v4846_v50 }
  0xf2   :  { %1329 = vperm.xlu0 %4709, %v5035_v29  }
  0xf3   :  { %3537 = vmatmul.mubr.f32.gmra.mrb[14].mxu1 %v5235_v20  ;;  %1321 = vperm.xlu1 %4705, %v4985_v18  }
  0xf4   :  { %3113 = vmatpush3.bf16.msra.mxu1 %v5233_v47  ;;  %799 = vmatprep.mubr.bf16.mxu1 %v414_v16  ;;  %v137_v16 = vsel %vm5182_vm1, %v40_v15, 0 }
  0xf5   :  { %3114 = vmatprep.subr.bf16.mxu1 %v5140_v60  ;;  %v5284_v33 = vcombine.low %v136_v5, %v137_v16 }
  0xf6   :  { %4710 = vset.pattern.permute.xlu0 %v4847_v51 }
  0xf7   :  { %5896 = vst [vmem:[#allocation9_spill] sm:$0xff] %v5284_v33  ;;  %732 = vperm.xlu0 %4710, %v4971_v14   ;;  %4706 = vset.pattern.permute.xlu1 %v4845_v48 }
  0xf8   :  { %3115 = vmatpush3.bf16.msra.mxu1 %v5244_v21  ;;  %720 = vperm.xlu1 %4706, %v5035_v29  }
  0xf9   :  { %3116 = vmatprep.subr.bf16.mxu1 %v5150_v0 }
  0xfb   :  { %740 = vperm.xlu0 %4710, %v5030_v28  }
  0xfc   :  { %3117 = vmatpush3.bf16.msra.mxu1 %v5252_v59  ;;  %4707 = vset.pattern.permute.xlu1 %v4847_v51 }
  0xfd   :  { %3118 = vmatprep.subr.bf16.mxu1 %v5160_v4  ;;  %736 = vperm.xlu1 %4707, %v4985_v18  }
 0x100   :  { %3119 = vmatpush3.bf16.msra.mxu1 %v5260_v63 }
 0x101   :  { %3120 = vmatprep.subr.bf16.mxu1 %v5170_v8  ;;  %4708 = vset.pattern.permute.xlu1 %v4846_v50 }
 0x102   :  { %1325 = vperm.xlu1 %4708, %v5030_v28  }
 0x104   :  { %3121 = vmatpush3.bf16.msra.mxu1 %v5268_v3 }
 0x105   :  { %3122 = vmatprep.subr.bf16.mxu1 %v5180_v12 }
 0x108   :  { %3123 = vmatpush3.bf16.msra.mxu1 %v5276_v7 }
 0x109   :  { %3124 = vmatprep.subr.bf16.mxu1 %v5190_v17 }
 0x10c   :  { %3125 = vmatpush3.bf16.msra.mxu1 %v5284_v33 }
 0x10d   :  { %4250 = vmatprep.subr.bf16.mxu1 %v4987_v19 }
 0x10f   :  { %800 = vmatmul.mubr.bf16.vlgmr.msra.gmra.mrb[16].mxu1 %v319_v55 }
 0x110   :  { %807 = vmatprep.mubr.bf16.mxu1 %v415_v10  ;;  %4252 = vmatpush3.bf16.msra.mxu1 %v4987_v19 }
 0x111   :  { %4254 = vmatprep.subr.bf16.mxu1 %v4999_v22 }
 0x114   :  { %4256 = vmatpush3.bf16.msra.mxu1 %v4999_v22 }
 0x115   :  { %4258 = vmatprep.subr.bf16.mxu1 %v5024_v27 }
 0x117   :  { %808 = vmatmul.mubr.bf16.gmra.mrb[20].mxu1 %v320_v54  ;;  %v4848_v54 = vmov 5  }
 0x118   :  { %4260 = vmatpush3.bf16.msra.mxu1 %v5024_v27  ;;  %4714 = vset.pattern.permute.xlu0 %v4848_v54 }
 0x119   :  { %4262 = vmatprep.subr.bf16.mxu1 %v5050_v32  ;;  %1353 = vperm.xlu0 %4714, %v5035_v29  }
 0x11a   :  { %4711 = vset.pattern.permute.xlu1 %v4848_v54 }
 0x11b   :  { %1341 = vperm.xlu1 %4711, %v4971_v14  }
 0x11c   :  { %4264 = vmatpush3.bf16.msra.mxu1 %v5050_v32 }
 0x11d   :  { %4266 = vmatprep.subr.bf16.mxu1 %v5062_v35 }
 0x11f   :  { %1345 = vperm.xlu1 %4711, %v4985_v18  }
 0x120   :  { %4268 = vmatpush3.bf16.msra.mxu1 %v5062_v35 }
 0x121   :  { %4270 = vmatprep.subr.bf16.mxu1 %v5074_v38 }
 0x123   :  { %4712 = vset.pattern.permute.xlu1 %v4847_v51 }
 0x124   :  { %4272 = vmatpush3.bf16.msra.mxu1 %v5074_v38  ;;  %744 = vperm.xlu1 %4712, %v5035_v29  }
 0x125   :  { %4274 = vmatprep.subr.bf16.mxu1 %v5086_v41 }
 0x128   :  { %4276 = vmatpush3.bf16.msra.mxu1 %v5086_v41  ;;  %4713 = vset.pattern.permute.xlu1 %v4848_v54 }
 0x129   :  { %4278 = vmatprep.subr.bf16.mxu1 %v5098_v46  ;;  %1349 = vperm.xlu1 %4713, %v5030_v28  }
 0x12c   :  { %4280 = vmatpush3.bf16.msra.mxu1 %v5098_v46 }
 0x12d   :  { %4314 = vmatprep.subr.bf16.mxu1 %v4987_v19 }
 0x1c2   :  { %v3535_v55 = vpop.f32.mrb[12].mxu1 }
 0x1c3   :  { %v5340_v10 = vsub.f32 %v5221_v42, %v3535_v55  ;;  %v591_v11 = vpop.f32.mrb[13].mxu1 }
 0x1c4   :  { %v5343_v15 = vsub.f32 %v5217_v31, %v591_v11 }
 0x1c5   :  { %v615_v30 = vmul.f32 %v5340_v10, %v5340_v10 }
 0x1c6   :  { %v3538_v34 = vpop.f32.mrb[14].mxu1  ;;  %v614_v36 = vmul.f32 %v5343_v15, %v5343_v15 }
 0x1c7   :  { %v5350_v37 = vsub.f32 %v5235_v20, %v3538_v34  ;;  %v601_v39 = vpop.f32.mrb[15].mxu1 }
 0x1c8   :  { %v5353_v43 = vsub.f32 %v5228_v49, %v601_v39  ;;  %3571 = vmatprep.mubr.f32.mxu0 %v614_v36 }
 0x1c9   :  { %3572 = vmatmul.mubr.f32.vlgmr.msra.gmra.mrb[0].mxu0 %v615_v30  ;;  %v617_v42 = vmul.f32 %v5350_v37, %v5350_v37 }
 0x1ca   :  { %v616_v31 = vmul.f32 %v5353_v43, %v5353_v43  ;;  %4220 = vmatpush3.bf16.msra.mxu0 %v4987_v19 }
 0x1cb   :  { %4222 = vmatprep.subr.bf16.mxu0 %v4999_v22 }
 0x1cc   :  { %3574 = vmatprep.mubr.f32.mxu0 %v616_v31  ;;  %v4747_v31 = vld [vmem:[%s5862_s4] sm:$0xff]  }
 0x1cd   :  { %3575 = vmatmul.mubr.f32.gmra.mrb[2].mxu0 %v617_v42  ;;  %v1004_v42 = vpop.permute.xlu1 %1003 }
 0x1ce   :  { %4224 = vmatpush3.bf16.msra.mxu0 %v4999_v22 }
 0x1cf   :  { %4226 = vmatprep.subr.bf16.mxu0 %v5024_v27 }
 0x1d2   :  { %4228 = vmatpush3.bf16.msra.mxu0 %v5024_v27 }
 0x1d3   :  { %4230 = vmatprep.subr.bf16.mxu0 %v5050_v32 }
 0x1d6   :  { %4232 = vmatpush3.bf16.msra.mxu0 %v5050_v32 }
 0x1d7   :  { %4234 = vmatprep.subr.bf16.mxu0 %v5062_v35 }
 0x1da   :  { %4236 = vmatpush3.bf16.msra.mxu0 %v5062_v35 }
 0x1db   :  { %4238 = vmatprep.subr.bf16.mxu0 %v5074_v38 }
 0x1de   :  { %4240 = vmatpush3.bf16.msra.mxu0 %v5074_v38 }
 0x1df   :  { %4242 = vmatprep.subr.bf16.mxu0 %v5086_v41 }
 0x1e2   :  { %v3126_v44 = vpop.f32.mrb[16].mxu1  ;;  %4244 = vmatpush3.bf16.msra.mxu0 %v5086_v41 }
 0x1e3   :  { %v3127_v49 = vpop.f32.mrb[17].mxu1  ;;  %4246 = vmatprep.subr.bf16.mxu0 %v5098_v46 }
 0x1e4   :  { %v3128_v20 = vadd.f32 %v3127_v49, %v3126_v44  ;;  %v3129_v25 = vpop.f32.mrb[18].mxu1 }
 0x1e5   :  { %v3130_v53 = vpop.f32.mrb[19].mxu1 }
 0x1e6   :  { %v3131_v26 = vadd.f32 %v3130_v53, %v3129_v25  ;;  %4248 = vmatpush3.bf16.msra.mxu0 %v5098_v46  ;;  %3609 = vmatprep.mubr.f32.mxu0 %v3128_v20  ;;  %v1000_v53 = vpop.permute.xlu0 %999 }
 0x1e9   :  { %3610 = vmatmul.mubr.f32.vlgmr.msra.gmra.mrb[4].mxu0 %v3131_v26 }
 0x1ea   :  { %v3132_v58 = vpop.f32.mrb[20].mxu1 }
 0x1eb   :  { %v3133_v57 = vpop.f32.mrb[21].mxu1 }
 0x1ec   :  { %v3134_v62 = vadd.f32 %v3133_v57, %v3132_v58  ;;  %v3135_v61 = vpop.f32.mrb[22].mxu1 }
 0x1ed   :  { %v3136_v2 = vpop.f32.mrb[23].mxu1 }
 0x1ee   :  { %v3137_v1 = vadd.f32 %v3136_v2, %v3135_v61  ;;  %3612 = vmatprep.mubr.f32.mxu0 %v3134_v62  ;;  %v1012_v2 = vpop.permute.xlu0 %1011 }
 0x1f0   :  { %3613 = vmatmul.mubr.f32.gmra.mrb[6].mxu0 %v3137_v1 }
 0x1f1   :  { %3657 = vmatprep.mubr.msk.bf16.mxu0 %vm1078_vm3, %v4747_v31 }
 0x29c   :  { %v5374_v6 = vpop.f32.mrb[0].mxu0 }
 0x29d   :  { %v5376_v5 = vpop.f32.mrb[1].mxu0 }
 0x2a0   :  { %v5378_v16 = vpop.f32.mrb[2].mxu0 }
 0x2a1   :  { %v5380_v9 = vpop.f32.mrb[3].mxu0 }
 0x2bc   :  { %v3611_v13 = vpop.f32.mrb[4].mxu0 }
 0x2bd   :  { %v902_v45 = vsub.f32 %v3131_v26, %v3611_v13  ;;  %v882_v48 = vpop.f32.mrb[5].mxu0  ;;  %v1008_v26 = vpop.permute.xlu1 %1007 }
 0x2be   :  { %v901_v50 = vsub.f32 %v3128_v20, %v882_v48 }
 0x2bf   :  { %v906_v54 = vmul.f32 %v902_v45, %v902_v45 }
 0x2c0   :  { %v905_v51 = vmul.f32 %v901_v50, %v901_v50 }
 0x2c2   :  { %3647 = vmatprep.mubr.f32.mxu1 %v905_v51 }
 0x2c3   :  { %v3614_v55 = vpop.f32.mrb[6].mxu0  ;;  %3648 = vmatmul.mubr.f32.vlgmr.msra.gmra.mrb[24].mxu1 %v906_v54 }
 0x2c4   :  { %v904_v11 = vsub.f32 %v3137_v1, %v3614_v55  ;;  %v892_v34 = vpop.f32.mrb[7].mxu0  ;;  %4316 = vmatpush3.bf16.msra.mxu1 %v4987_v19  ;;  %v1024_v1 = vpop.permute.xlu1 %1023 }
 0x2c5   :  { %v903_v36 = vsub.f32 %v3134_v62, %v892_v34  ;;  %4318 = vmatprep.subr.bf16.mxu1 %v4999_v22  ;;  %v1028_v34 = vpop.permute.xlu0 %1027 }
 0x2c6   :  { %v908_v39 = vmul.f32 %v904_v11, %v904_v11 }
 0x2c7   :  { %v907_v30 = vmul.f32 %v903_v36, %v903_v36 }
 0x2c8   :  { %4320 = vmatpush3.bf16.msra.mxu1 %v4999_v22 }
 0x2c9   :  { %3650 = vmatprep.mubr.f32.mxu1 %v907_v30  ;;  %4322 = vmatprep.subr.bf16.mxu1 %v5024_v27 }
 0x2ca   :  { %3651 = vmatmul.mubr.f32.gmra.mrb[26].mxu1 %v908_v39  ;;  %v1032_v39 = vpop.permute.xlu1 %1031 }
 0x2cc   :  { %4324 = vmatpush3.bf16.msra.mxu1 %v5024_v27 }
 0x2cd   :  { %4326 = vmatprep.subr.bf16.mxu1 %v5050_v32 }
 0x2d0   :  { %4328 = vmatpush3.bf16.msra.mxu1 %v5050_v32 }
 0x2d1   :  { %4330 = vmatprep.subr.bf16.mxu1 %v5062_v35 }
 0x2d4   :  { %4332 = vmatpush3.bf16.msra.mxu1 %v5062_v35 }
 0x2d5   :  { %4334 = vmatprep.subr.bf16.mxu1 %v5074_v38 }
 0x2d8   :  { %4336 = vmatpush3.bf16.msra.mxu1 %v5074_v38 }
 0x2d9   :  { %4338 = vmatprep.subr.bf16.mxu1 %v5086_v41 }
 0x2dc   :  { %4340 = vmatpush3.bf16.msra.mxu1 %v5086_v41 }
 0x2dd   :  { %4342 = vmatprep.subr.bf16.mxu1 %v5098_v46 }
 0x2e0   :  { %4344 = vmatpush3.bf16.msra.mxu1 %v5098_v46 }
 0x2e1   :  { %4346 = vmatprep.subr.bf16.mxu1 %v4987_v19 }
 0x396   :  { %v3649_v44 = vpop.f32.mrb[24].mxu1 }
 0x397   :  { %v981_v49 = vadd.f32 1e-05, %v3649_v44  ;;  %v975_v20 = vpop.f32.mrb[25].mxu1 }
 0x398   :  { %v976_v25 = vadd.f32 1e-05, %v975_v20 }
 0x399   :  { %4759 = vrsqrt.f32 %v981_v49 }
 0x39a   :  { %4761 = vrsqrt.f32 %v976_v25 }
 0x39d   :  { %v3652_v58 = vpop.f32.mrb[26].mxu1 }
 0x39e   :  { %v991_v57 = vadd.f32 1e-05, %v3652_v58  ;;  %v985_v62 = vpop.f32.mrb[27].mxu1 }
 0x39f   :  { %v986_v61 = vadd.f32 1e-05, %v985_v62 }
 0x3a0   :  { %4763 = vrsqrt.f32 %v991_v57 }
 0x3a1   :  { %4765 = vrsqrt.f32 %v986_v61  ;;  %v1036_v61 = vpop.permute.xlu1 %1035 }
 0x3a3   :  { %v4760_v13 = vpop.eup %4759 }
 0x3a4   :  { %v4762_v48 = vpop.eup %4761  ;;  %v1015_v51 = vmul.f32 %v4760_v13, %v1004_v42 }
 0x3a5   :  { %v1014_v54 = vmul.f32 %v4762_v48, %v1000_v53 }
 0x3a6   :  { %v1019_v55 = vmul.f32 %v1015_v51, %v902_v45 }
 0x3a7   :  { %v1018_v30 = vmul.f32 %v1014_v54, %v901_v50 }
 0x3a8   :  { %v1039_v31 = vadd.f32 %v1028_v34, %v1019_v55 }
 0x3a9   :  { %v1038_v44 = vadd.f32 %v1024_v1, %v1018_v30  ;;  %v4748_v1 = vld [vmem:[%s5862_s4 + $0x8] sm:$0xff]  }
 0x3aa   :  { %v4764_v49 = vpop.eup %4763  ;;  %v1043_v20 = vmax.f32 %v1039_v31, 0.0 }
 0x3ab   :  { %v4766_v25 = vpop.eup %4765  ;;  %v1042_v58 = vmax.f32 %v1038_v44, 0.0  ;;  %v1017_v33 = vmul.f32 %v4764_v49, %v1012_v2 }
 0x3ac   :  { %v1016_v62 = vmul.f32 %v4766_v25, %v1008_v26 }
 0x3ad   :  { %v1050_v57 = vpack.c.bf16 %v1043_v20, %v1042_v58  ;;  %v1021_v17 = vmul.f32 %v1017_v33, %v904_v11 }
 0x3ae   :  { %v1020_v7 = vmul.f32 %v1016_v62, %v903_v36 }
 0x3af   :  { %3653 = vmatprep.subr.bf16.mxu0 %v1050_v57  ;;  %v1041_v12 = vadd.f32 %v1036_v61, %v1021_v17  ;;  %v4749_v61 = vld [vmem:[%s5863_s5] sm:$0xff]  }
 0x3b0   :  { %3654 = vmatpush3.bf16.msra.mxu0 %v1050_v57  ;;  %v1040_v42 = vadd.f32 %v1032_v39, %v1020_v7  ;;  %v1054_v7 = vpop.permute.xlu0 %1053 }
 0x3b1   :  { %v1045_v45 = vmax.f32 %v1041_v12, 0.0  ;;  %v1058_v12 = vpop.permute.xlu1 %1057 }
 0x3b2   :  { %v1044_v53 = vmax.f32 %v1040_v42, 0.0  ;;  %v4849_v42 = vmov 8  }
 0x3b3   :  { %4715 = vset.pattern.permute.xlu1 %v4849_v42  ;;  %4716 = vset.pattern.permute.xlu0 %v4849_v42 }
 0x3b4   :  { %v1051_v50 = vpack.c.bf16 %v1045_v45, %v1044_v53  ;;  %v1066_v51 = vpop.permute.xlu0 %1065  ;;  %v4811_v45 = vld [vmem:[%s5867_s9 + $0x20] sm:$0xff]  ;;  %1383 = vperm.xlu0 %4716, %v4971_v14   ;;  %v4812_v53 = vld [vmem:[%s5867_s9 + $0x28] sm:$0xff] }
 0x3b5   :  { %v1062_v2 = vpop.permute.xlu1 %1061  ;;  %1470 = vperm.xlu1 %4715, %v4811_v45  }
 0x3b6   :  { %3655 = vmatprep.subr.bf16.mxu0 %v1051_v50 }
 0x3b7   :  { %3656 = vmatpush3.bf16.msra.mxu0 %v1051_v50 }
 0x3b8   :  { %4282 = vmatprep.subr.bf16.mxu0 %v4987_v19  ;;  %1482 = vperm.xlu0 %4716, %v5011_v24   ;;  %v713_v14 = vpop.permute.xlu0 %712  ;;  %v700_v24 = vadd.f32 1e-05, %v5378_v16 }
 0x3b9   :  { %1474 = vperm.xlu1 %4715, %v4812_v53   ;;  %v709_v50 = vpop.permute.xlu1 %708 }
 0x3ba   :  { %3658 = vmatmul.mubr.msk.bf16.vlgmr.msra.gmra.mrb[8].mxu0 %vm1078_vm3, %v4748_v1 }
 0x3bb   :  { %4284 = vmatpush3.bf16.msra.mxu0 %v4987_v19 }
 0x3bc   :  { %4286 = vmatprep.subr.bf16.mxu0 %v4999_v22  ;;  %1395 = vperm.xlu0 %4716, %v5035_v29   ;;  %v695_v29 = vadd.f32 1e-05, %v5380_v9 }
 0x3bd   :  { %1387 = vperm.xlu1 %4715, %v4985_v18   ;;  %v1318_v1 = vpop.permute.xlu1 %1317  ;;  %v717_v18 = vpop.permute.xlu0 %716 }
 0x3bf   :  { %4288 = vmatpush3.bf16.msra.mxu0 %v4999_v22 }
 0x3c0   :  { %4290 = vmatprep.subr.bf16.mxu0 %v5024_v27 }
 0x3c1   :  { %1478 = vperm.xlu1 %4715, %v5005_v23  }
 0x3c3   :  { %4292 = vmatpush3.bf16.msra.mxu0 %v5024_v27 }
 0x3c4   :  { %4294 = vmatprep.subr.bf16.mxu0 %v5050_v32 }
 0x3c5   :  { %1391 = vperm.xlu1 %4715, %v5030_v28  }
 0x3c7   :  { %4296 = vmatpush3.bf16.msra.mxu0 %v5050_v32 }
 0x3c8   :  { %4298 = vmatprep.subr.bf16.mxu0 %v5062_v35 }
 0x3cb   :  { %4300 = vmatpush3.bf16.msra.mxu0 %v5062_v35 }
 0x3cc   :  { %4302 = vmatprep.subr.bf16.mxu0 %v5074_v38 }
 0x3cf   :  { %4304 = vmatpush3.bf16.msra.mxu0 %v5074_v38 }
 0x3d0   :  { %4306 = vmatprep.subr.bf16.mxu0 %v5086_v41 }
 0x3d3   :  { %4308 = vmatpush3.bf16.msra.mxu0 %v5086_v41 }
 0x3d4   :  { %4310 = vmatprep.subr.bf16.mxu0 %v5098_v46 }
 0x3d7   :  { %4312 = vmatpush3.bf16.msra.mxu0 %v5098_v46 }
 0x48d   :  { %v3659_v17 = vpop.f32.mrb[8].mxu0 }
 0x48e   :  { %v1119_v33 = vpop.f32.mrb[9].mxu0  ;;  %v1128_v48 = vadd.f32 %v3659_v17, %v1062_v2 }
 0x48f   :  { %v1120_v11 = vadd.f32 %v1119_v33, %v1054_v7  ;;  %v3660_v36 = vpop.f32.mrb[10].mxu0  ;;  %v690_v33 = vadd.f32 1e-05, %v5374_v6 }
 0x490   :  { %v1122_v26 = vpop.f32.mrb[11].mxu0  ;;  %v1131_v54 = vadd.f32 %v3660_v36, %v1066_v51 }
 0x491   :  { %v1123_v13 = vadd.f32 %v1122_v26, %v1058_v12  ;;  %3693 = vmatprep.mubr.f32.mxu0 %v1120_v11  ;;  %v1322_v12 = vpop.permute.xlu1 %1321  ;;  %4767 = vrsqrt.f32 %v690_v33 }
 0x493   :  { %3694 = vmatmul.mubr.f32.vlgmr.msra.gmra.mrb[12].mxu0 %v1123_v13 }
 0x494   :  { %3696 = vmatprep.mubr.f32.mxu0 %v1128_v48 }
 0x495   :  { %v721_v17 = vpop.permute.xlu1 %720 }
 0x497   :  { %3697 = vmatmul.mubr.f32.gmra.mrb[14].mxu0 %v1131_v54 }
 0x498   :  { %3741 = vmatprep.mubr.msk.bf16.mxu0 %vm1078_vm3, %v4749_v61 }
 0x499   :  { %v737_v7 = vpop.permute.xlu1 %736 }
 0x49b   :  { %v4768_v16 = vpop.eup %4767 }
 0x49d   :  { %v1326_v23 = vpop.permute.xlu1 %1325 }
 0x566   :  { %v3695_v55 = vpop.f32.mrb[12].mxu0 }
 0x567   :  { %v5422_v34 = vsub.f32 %v1123_v13, %v3695_v55  ;;  %v1200_v30 = vpop.f32.mrb[13].mxu0  ;;  %v1330_v13 = vpop.permute.xlu0 %1329 }
 0x568   :  { %v5424_v39 = vsub.f32 %v1120_v11, %v1200_v30  ;;  %v685_v11 = vadd.f32 1e-05, %v5376_v5  ;;  %v724_v30 = vmul.f32 %v4768_v16, %v713_v14 }
 0x569   :  { %v1224_v49 = vmul.f32 %v5422_v34, %v5422_v34 }
 0x56a   :  { %v1223_v31 = vmul.f32 %v5424_v39, %v5424_v39  ;;  %v3698_v44 = vpop.f32.mrb[14].mxu0  ;;  %4769 = vrsqrt.f32 %v685_v11  ;;  %v728_v61 = vmul.f32 %v724_v30, %v5340_v10 }
 0x56b   :  { %v5430_v20 = vsub.f32 %v1131_v54, %v3698_v44  ;;  %v1210_v25 = vpop.f32.mrb[15].mxu0  ;;  %4771 = vrsqrt.f32 %v700_v24  ;;  %v733_v9 = vpop.permute.xlu0 %732 }
 0x56c   :  { %v5432_v58 = vsub.f32 %v1128_v48, %v1210_v25  ;;  %3731 = vmatprep.mubr.f32.mxu1 %v1223_v31  ;;  %4773 = vrsqrt.f32 %v695_v29  ;;  %v1342_v48 = vpop.permute.xlu1 %1341 }
 0x56d   :  { %3732 = vmatmul.mubr.f32.vlgmr.msra.gmra.mrb[28].mxu1 %v1224_v49  ;;  %v1226_v57 = vmul.f32 %v5430_v20, %v5430_v20 }
 0x56e   :  { %v1225_v62 = vmul.f32 %v5432_v58, %v5432_v58  ;;  %4348 = vmatpush3.bf16.msra.mxu1 %v4987_v19 }
 0x56f   :  { %4350 = vmatprep.subr.bf16.mxu1 %v4999_v22  ;;  %v741_v11 = vpop.permute.xlu0 %740 }
 0x570   :  { %3734 = vmatprep.mubr.f32.mxu1 %v1225_v62  ;;  %v1346_v31 = vpop.permute.xlu1 %1345 }
 0x571   :  { %3735 = vmatmul.mubr.f32.gmra.mrb[30].mxu1 %v1226_v57 }
 0x572   :  { %4352 = vmatpush3.bf16.msra.mxu1 %v4999_v22 }
 0x573   :  { %4354 = vmatprep.subr.bf16.mxu1 %v5024_v27 }
 0x574   :  { %v4770_v55 = vpop.eup %4769  ;;  %v745_v29 = vpop.permute.xlu1 %744 }
 0x575   :  { %v4772_v44 = vpop.eup %4771  ;;  %v723_v49 = vmul.f32 %v4770_v55, %v709_v50  ;;  %v748_v50 = vadd.f32 %v737_v7, %v728_v61  ;;  %v4752_v61 = vld [vmem:[%s5863_s5 + $0x18] sm:$0xff]  }
 0x576   :  { %4356 = vmatpush3.bf16.msra.mxu1 %v5024_v27  ;;  %v4774_v25 = vpop.eup %4773  ;;  %v726_v42 = vmul.f32 %v4772_v44, %v721_v17  ;;  %v1354_v17 = vpop.permute.xlu0 %1353 }
 0x577   :  { %4358 = vmatprep.subr.bf16.mxu1 %v5050_v32  ;;  %v725_v53 = vmul.f32 %v4774_v25, %v717_v18  ;;  %v727_v33 = vmul.f32 %v723_v49, %v5343_v15 }
 0x579   :  { %v747_v10 = vadd.f32 %v733_v9, %v727_v33  ;;  %v5900_v33 = vld [vmem:[#allocation9_spill] sm:$0xff] }
 0x57a   :  { %4360 = vmatpush3.bf16.msra.mxu1 %v5050_v32 }
 0x57b   :  { %4362 = vmatprep.subr.bf16.mxu1 %v5062_v35 }
 0x57e   :  { %4364 = vmatpush3.bf16.msra.mxu1 %v5062_v35 }
 0x57f   :  { %4366 = vmatprep.subr.bf16.mxu1 %v5074_v38 }
 0x582   :  { %4368 = vmatpush3.bf16.msra.mxu1 %v5074_v38 }
 0x583   :  { %4370 = vmatprep.subr.bf16.mxu1 %v5086_v41 }
 0x586   :  { %4372 = vmatpush3.bf16.msra.mxu1 %v5086_v41 }
 0x587   :  { %4374 = vmatprep.subr.bf16.mxu1 %v5098_v46 }
 0x58a   :  { %4376 = vmatpush3.bf16.msra.mxu1 %v5098_v46 }
 0x640   :  { %v3733_v36 = vpop.f32.mrb[28].mxu1 }
 0x641   :  { %v1299_v28 = vadd.f32 1e-05, %v3733_v36  ;;  %v1293_v26 = vpop.f32.mrb[29].mxu1 }
 0x642   :  { %v1294_v2 = vadd.f32 1e-05, %v1293_v26 }
 0x643   :  { %4775 = vrsqrt.f32 %v1299_v28 }
 0x644   :  { %4777 = vrsqrt.f32 %v1294_v2  ;;  %v3736_v6 = vpop.f32.mrb[30].mxu1  ;;  %v730_v2 = vmul.f32 %v726_v42, %v5350_v37  ;;  %v5897_v42 = vld [vmem:[#allocation6_spill] sm:$0xff] }
 0x645   :  { %v1309_v5 = vadd.f32 1e-05, %v3736_v6  ;;  %v1303_v51 = vpop.f32.mrb[31].mxu1 }
 0x646   :  { %v1304_v54 = vadd.f32 1e-05, %v1303_v51  ;;  %v1350_v51 = vpop.permute.xlu1 %1349 }
 0x647   :  { %4779 = vrsqrt.f32 %v1309_v5 }
 0x648   :  { %4781 = vrsqrt.f32 %v1304_v54 }
 0x64d   :  { %v4776_v62 = vpop.eup %4775 }
 0x64e   :  { %v4778_v57 = vpop.eup %4777  ;;  %v1333_v45 = vmul.f32 %v4776_v62, %v1322_v12  ;;  %v729_v12 = vmul.f32 %v725_v53, %v5353_v43  ;;  %v4750_v62 = vld [vmem:[%s5863_s5 + $0x8] sm:$0xff]   ;;  %v5899_v53 = vld [vmem:[#allocation7_spill] sm:$0xff] }
 0x64f   :  { %v1332_v24 = vmul.f32 %v4778_v57, %v1318_v1  ;;  %v4751_v57 = vld [vmem:[%s5863_s5 + $0x10] sm:$0xff]  }
 0x650   :  { %v1337_v36 = vmul.f32 %v1333_v45, %v5422_v34  ;;  %v749_v37 = vadd.f32 %v741_v11, %v729_v12  ;;  %v5898_v45 = vld [vmem:[#allocation8_spill] sm:$0xff]  ;;  %v1471_v11 = vpop.permute.xlu1 %1470 }
 0x651   :  { %v4780_v28 = vpop.eup %4779  ;;  %v1336_v14 = vmul.f32 %v1332_v24, %v5424_v39  ;;  %v750_v39 = vadd.f32 %v745_v29, %v730_v2 }
 0x652   :  { %v4782_v26 = vpop.eup %4781  ;;  %v1335_v6 = vmul.f32 %v4780_v28, %v1330_v13  ;;  %v1357_v5 = vadd.f32 %v1346_v31, %v1337_v36  ;;  %v1384_v36 = vpop.permute.xlu0 %1383 }
 0x653   :  { %v1334_v18 = vmul.f32 %v4782_v26, %v1326_v23  ;;  %v1356_v15 = vadd.f32 %v1342_v48, %v1336_v14 }
 0x654   :  { %v1339_v1 = vmul.f32 %v1335_v6, %v5430_v20  ;;  %v1361_v54 = vadd.f32 %v1357_v5, %v748_v50  ;;  %v1475_v24 = vpop.permute.xlu1 %1474 }
 0x655   :  { %v1338_v34 = vmul.f32 %v1334_v18, %v5432_v58  ;;  %v1360_v16 = vadd.f32 %v1356_v15, %v747_v10 }
 0x656   :  { %v1359_v55 = vadd.f32 %v1354_v17, %v1339_v1  ;;  %vm1365_vm7 = vcmp.gt.f32.partialorder %v1361_v54, 0.0  ;;  %v1369_v7 = vmul.f32 0.01, %v1361_v54  ;;  %v1483_v14 = vpop.permute.xlu0 %1482 }
 0x657   :  { %v1358_v13 = vadd.f32 %v1350_v51, %v1338_v34  ;;  %vm1364_vm11 = vcmp.gt.f32.partialorder %v1360_v16, 0.0  ;;  %v1368_v9 = vmul.f32 0.01, %v1360_v16 }
 0x658   :  { %v1363_v30 = vadd.f32 %v1359_v55, %v750_v39  ;;  %v5481_v43 = vsel %vm1365_vm7, %v1361_v54, %v1369_v7  ;;  %v1388_v29 = vpop.permute.xlu1 %1387 }
 0x659   :  { %v1362_v23 = vadd.f32 %v1358_v13, %v749_v37  ;;  %v5483_v48 = vsel %vm1364_vm11, %v1360_v16, %v1368_v9 }
 0x65a   :  { %vm1367_vm15 = vcmp.gt.f32.partialorder %v1363_v30, 0.0  ;;  %v1371_v20 = vmul.f32 0.01, %v1363_v30  ;;  %v1376_v58 = vpack.c.bf16 %v5481_v43, %v5483_v48  ;;  %v1396_v2 = vpop.permute.xlu0 %1395 }
 0x65b   :  { %vm1366_vm2 = vcmp.gt.f32.partialorder %v1362_v23, 0.0  ;;  %v1370_v31 = vmul.f32 0.01, %v1362_v23 }
 0x65c   :  { %v5487_v44 = vsel %vm1367_vm15, %v1363_v30, %v1371_v20  ;;  %3737 = vmatprep.subr.bf16.mxu0 %v1376_v58  ;;  %v1479_v28 = vpop.permute.xlu1 %1478 }
 0x65d   :  { %v5489_v49 = vsel %vm1366_vm2, %v1362_v23, %v1370_v31  ;;  %3738 = vmatpush3.bf16.msra.mxu0 %v1376_v58 }
 0x65e   :  { %v1377_v25 = vpack.c.bf16 %v5487_v44, %v5489_v49 }
 0x660   :  { %3739 = vmatprep.subr.bf16.mxu0 %v1377_v25  ;;  %v1392_v26 = vpop.permute.xlu1 %1391 }
 0x661   :  { %3740 = vmatpush3.bf16.msra.mxu0 %v1377_v25 }
 0x662   :  { %3745 = vmatprep.subr.bf16.mxu0 %v1376_v58 }
 0x664   :  { %3742 = vmatmul.mubr.msk.bf16.vlgmr.msra.gmra.mrb[16].mxu0 %vm1078_vm3, %v4750_v62 }
 0x665   :  { %3746 = vmatpush3.bf16.msra.mxu0 %v1376_v58  ;;  %3749 = vmatprep.mubr.msk.bf16.mxu0 %vm1078_vm3, %v4751_v57 }
 0x666   :  { %3747 = vmatprep.subr.bf16.mxu0 %v1377_v25 }
 0x669   :  { %3748 = vmatpush3.bf16.msra.mxu0 %v1377_v25 }
 0x66a   :  { %3230 = vmatprep.subr.bf16.mxu0 %v5118_v52 }
 0x66c   :  { %3750 = vmatmul.mubr.msk.bf16.vlgmr.msra.gmra.mrb[20].mxu0 %vm1078_vm3, %v4752_v61 }
 0x66d   :  { %3231 = vmatpush3.bf16.msra.mxu0 %v5219_v40 }
 0x66e   :  { %3232 = vmatprep.subr.bf16.mxu0 %v5130_v56 }
 0x671   :  { %3233 = vmatpush3.bf16.msra.mxu0 %v5233_v47 }
 0x672   :  { %3234 = vmatprep.subr.bf16.mxu0 %v5140_v60 }
 0x675   :  { %3235 = vmatpush3.bf16.msra.mxu0 %v5244_v21 }
 0x676   :  { %3236 = vmatprep.subr.bf16.mxu0 %v5150_v0 }
 0x679   :  { %3237 = vmatpush3.bf16.msra.mxu0 %v5252_v59 }
 0x67a   :  { %3238 = vmatprep.subr.bf16.mxu0 %v5160_v4 }
 0x67d   :  { %3239 = vmatpush3.bf16.msra.mxu0 %v5260_v63 }
 0x67e   :  { %3240 = vmatprep.subr.bf16.mxu0 %v5170_v8 }
 0x681   :  { %3241 = vmatpush3.bf16.msra.mxu0 %v5268_v3 }
 0x682   :  { %3242 = vmatprep.subr.bf16.mxu0 %v5897_v42 }
 0x685   :  { %3243 = vmatpush3.bf16.msra.mxu0 %v5898_v45 }
 0x686   :  { %3244 = vmatprep.subr.bf16.mxu0 %v5899_v53 }
 0x689   :  { %3245 = vmatpush3.bf16.msra.mxu0 %v5900_v33 }
 0x68a   :  { %4378 = vmatprep.subr.bf16.mxu0 %v4987_v19 }
 0x737   :  { %v3743_v50 = vpop.f32.mrb[16].mxu0 }
 0x738   :  { %v1448_v6 = vpop.f32.mrb[17].mxu0  ;;  %v1457_v10 = vadd.f32 %v3743_v50, %v1392_v26  ;;  %v5547_v26 = vld [vmem:[%s5867_s9 + $0x8] sm:$0xff]  ;;  %v5553_v50 = vld [vmem:[%s5867_s9 + $0x10] sm:$0xff] }
 0x739   :  { %v3744_v5 = vpop.f32.mrb[18].mxu0  ;;  %v1449_v18 = vadd.f32 %v1448_v6, %v1384_v36  ;;  %v5560_v6 = vld [vmem:[%s5867_s9 + $0x18] sm:$0xff] }
 0x73a   :  { %v1460_v12 = vadd.f32 %v3744_v5, %v1396_v2  ;;  %v1451_v17 = vpop.f32.mrb[19].mxu0  ;;  %v4851_v2 = vmov 10  }
 0x73b   :  { %v1452_v15 = vadd.f32 %v1451_v17, %v1388_v29 }
 0x73c   :  { %v1464_v1 = vpack.c.bf16 %v1460_v12, %v1457_v10 }
 0x73d   :  { %v1463_v51 = vpack.c.bf16 %v1452_v15, %v1449_v18 }
 0x73f   :  { %v3751_v54 = vpop.f32.mrb[20].mxu0 }
 0x740   :  { %v1535_v34 = vpop.f32.mrb[21].mxu0  ;;  %v1544_v39 = vadd.f32 %v3751_v54, %v1479_v28  ;;  %v4850_v28 = vmov 9  }
 0x741   :  { %v3752_v16 = vpop.f32.mrb[22].mxu0  ;;  %v1536_v37 = vadd.f32 %v1535_v34, %v1471_v11  ;;  %4717 = vset.pattern.permute.xlu1 %v4850_v28  ;;  %4718 = vset.pattern.permute.xlu0 %v4850_v28 }
 0x742   :  { %v1547_v55 = vadd.f32 %v3752_v16, %v1483_v14  ;;  %v1538_v7 = vpop.f32.mrb[23].mxu0  ;;  %v5541_v14 = vld [vmem:[%s5867_s9] sm:$0xff]  ;;  %1788 = vperm.xlu0 %4718, %v5547_v26  }
 0x743   :  { %v1539_v13 = vadd.f32 %v1538_v7, %v1475_v24  ;;  %1784 = vperm.xlu1 %4717, %v5541_v14   ;;  %v4852_v7 = vmov 11  }
 0x744   :  { %v1551_v9 = vpack.c.bf16 %v1547_v55, %v1544_v39  ;;  %v4753_v55 = vld [vmem:[%s5864_s6] sm:$0xff]  }
 0x745   :  { %v1550_v30 = vpack.c.bf16 %v1539_v13, %v1536_v37 }
 0x746   :  { %4719 = vset.pattern.permute.xlu0 %v4851_v2 }
 0x747   :  { %1584 = vmatprep.mubr.bf16.mxu0 %v1550_v30  ;;  %1792 = vperm.xlu1 %4717, %v5553_v50  }
 0x748   :  { %1585 = vmatmul.mubr.bf16.vlgmr.msra.gmra.mrb[24].mxu0 %v1463_v51  ;;  %1808 = vperm.xlu0 %4719, %v5541_v14  }
 0x749   :  { %1592 = vmatprep.mubr.bf16.mxu0 %v1551_v9  ;;  %4380 = vmatpush3.bf16.msra.mxu0 %v4987_v19 }
 0x74a   :  { %4382 = vmatprep.subr.bf16.mxu0 %v4999_v22 }
 0x74b   :  { %1796 = vperm.xlu1 %4717, %v5560_v6  }
 0x74c   :  { %1820 = vperm.xlu0 %4719, %v5560_v6  }
 0x74d   :  { %4384 = vmatpush3.bf16.msra.mxu0 %v4999_v22 }
 0x74e   :  { %4386 = vmatprep.subr.bf16.mxu0 %v5024_v27 }
 0x74f   :  { %4720 = vset.pattern.permute.xlu1 %v4851_v2 }
 0x750   :  { %1593 = vmatmul.mubr.bf16.gmra.mrb[28].mxu0 %v1464_v1  ;;  %1812 = vperm.xlu1 %4720, %v5547_v26  }
 0x751   :  { %4388 = vmatpush3.bf16.msra.mxu0 %v5024_v27  ;;  %4722 = vset.pattern.permute.xlu0 %v4852_v7 }
 0x752   :  { %4390 = vmatprep.subr.bf16.mxu0 %v5050_v32  ;;  %1842 = vperm.xlu0 %4722, %v5547_v26  }
 0x754   :  { %1816 = vperm.xlu1 %4720, %v5553_v50  }
 0x755   :  { %4392 = vmatpush3.bf16.msra.mxu0 %v5050_v32 }
 0x756   :  { %4394 = vmatprep.subr.bf16.mxu0 %v5062_v35 }
 0x758   :  { %4721 = vset.pattern.permute.xlu1 %v4852_v7 }
 0x759   :  { %4396 = vmatpush3.bf16.msra.mxu0 %v5062_v35  ;;  %1838 = vperm.xlu1 %4721, %v5541_v14  }
 0x75a   :  { %4398 = vmatprep.subr.bf16.mxu0 %v5074_v38 }
 0x75d   :  { %4400 = vmatpush3.bf16.msra.mxu0 %v5074_v38  ;;  %1846 = vperm.xlu1 %4721, %v5553_v50  }
 0x75e   :  { %4402 = vmatprep.subr.bf16.mxu0 %v5086_v41 }
 0x761   :  { %4404 = vmatpush3.bf16.msra.mxu0 %v5086_v41  ;;  %1850 = vperm.xlu1 %4721, %v5560_v6  }
 0x762   :  { %4406 = vmatprep.subr.bf16.mxu0 %v5098_v46 }
 0x765   :  { %4408 = vmatpush3.bf16.msra.mxu0 %v5098_v46 }
 0x766   :  { %4442 = vmatprep.subr.bf16.mxu0 %v4987_v19 }
 0x7c2   :  { %v1785_v37 = vpop.permute.xlu1 %1784 }
 0x81b   :  { %v3246_v23 = vpop.f32.mrb[24].mxu0 }
 0x81c   :  { %v3247_v20 = vpop.f32.mrb[25].mxu0 }
 0x81d   :  { %v3248_v58 = vadd.f32 %v3247_v20, %v3246_v23  ;;  %v3249_v31 = vpop.f32.mrb[26].mxu0  ;;  %v1793_v20 = vpop.permute.xlu1 %1792 }
 0x81e   :  { %v3250_v25 = vpop.f32.mrb[27].mxu0 }
 0x81f   :  { %v3251_v62 = vadd.f32 %v3250_v25, %v3249_v31  ;;  %3785 = vmatprep.mubr.f32.mxu1 %v3248_v58 }
 0x821   :  { %3786 = vmatmul.mubr.f32.vlgmr.msra.gmra.mrb[32].mxu1 %v3251_v62 }
 0x823   :  { %v3252_v57 = vpop.f32.mrb[28].mxu0 }
 0x824   :  { %v3253_v61 = vpop.f32.mrb[29].mxu0 }
 0x825   :  { %v3254_v11 = vadd.f32 %v3253_v61, %v3252_v57  ;;  %v3255_v24 = vpop.f32.mrb[30].mxu0  ;;  %v1789_v57 = vpop.permute.xlu0 %1788 }
 0x826   :  { %v3256_v29 = vpop.f32.mrb[31].mxu0  ;;  %v1797_v61 = vpop.permute.xlu1 %1796 }
 0x827   :  { %v3257_v36 = vadd.f32 %v3256_v29, %v3255_v24  ;;  %3788 = vmatprep.mubr.f32.mxu1 %v3254_v11 }
 0x829   :  { %3789 = vmatmul.mubr.f32.gmra.mrb[34].mxu1 %v3257_v36 }
 0x82a   :  { %3833 = vmatprep.mubr.msk.bf16.mxu1 %vm1078_vm3, %v4753_v55 }
 0x8f4   :  { %v3787_v5 = vpop.f32.mrb[32].mxu1 }
 0x8f5   :  { %v1687_v10 = vsub.f32 %v3251_v62, %v3787_v5  ;;  %v1667_v12 = vpop.f32.mrb[33].mxu1  ;;  %v1809_v5 = vpop.permute.xlu0 %1808 }
 0x8f6   :  { %v1686_v17 = vsub.f32 %v3248_v58, %v1667_v12 }
 0x8f7   :  { %v1691_v15 = vmul.f32 %v1687_v10, %v1687_v10 }
 0x8f8   :  { %v1690_v18 = vmul.f32 %v1686_v17, %v1686_v17 }
 0x8fa   :  { %3823 = vmatprep.mubr.f32.mxu0 %v1690_v18 }
 0x8fb   :  { %3824 = vmatmul.mubr.f32.vlgmr.msra.gmra.mrb[32].mxu0 %v1691_v15 }
 0x8fc   :  { %v3790_v1 = vpop.f32.mrb[34].mxu1  ;;  %4444 = vmatpush3.bf16.msra.mxu0 %v4987_v19 }
 0x8fd   :  { %v5567_v51 = vsub.f32 %v3257_v36, %v3790_v1  ;;  %v1677_v54 = vpop.f32.mrb[35].mxu1  ;;  %4446 = vmatprep.subr.bf16.mxu0 %v4999_v22  ;;  %v1813_v36 = vpop.permute.xlu1 %1812 }
 0x8fe   :  { %v1688_v34 = vsub.f32 %v3254_v11, %v1677_v54 }
 0x8ff   :  { %v1693_v39 = vmul.f32 %v5567_v51, %v5567_v51 }
 0x900   :  { %v1692_v16 = vmul.f32 %v1688_v34, %v1688_v34  ;;  %4448 = vmatpush3.bf16.msra.mxu0 %v4999_v22 }
 0x901   :  { %4450 = vmatprep.subr.bf16.mxu0 %v5024_v27 }
 0x902   :  { %3826 = vmatprep.mubr.f32.mxu0 %v1692_v16 }
 0x903   :  { %3827 = vmatmul.mubr.f32.gmra.mrb[34].mxu0 %v1693_v39 }
 0x904   :  { %4452 = vmatpush3.bf16.msra.mxu0 %v5024_v27 }
 0x905   :  { %4454 = vmatprep.subr.bf16.mxu0 %v5050_v32 }
 0x908   :  { %4456 = vmatpush3.bf16.msra.mxu0 %v5050_v32 }
 0x909   :  { %4458 = vmatprep.subr.bf16.mxu0 %v5062_v35 }
 0x90c   :  { %4460 = vmatpush3.bf16.msra.mxu0 %v5062_v35 }
 0x90d   :  { %4462 = vmatprep.subr.bf16.mxu0 %v5074_v38 }
 0x910   :  { %4464 = vmatpush3.bf16.msra.mxu0 %v5074_v38 }
 0x911   :  { %4466 = vmatprep.subr.bf16.mxu0 %v5086_v41 }
 0x914   :  { %4468 = vmatpush3.bf16.msra.mxu0 %v5086_v41 }
 0x915   :  { %4470 = vmatprep.subr.bf16.mxu0 %v5098_v46 }
 0x918   :  { %4472 = vmatpush3.bf16.msra.mxu0 %v5098_v46 }
 0x919   :  { %4474 = vmatprep.subr.bf16.mxu0 %v4987_v19 }
 0x9ce   :  { %v3825_v13 = vpop.f32.mrb[32].mxu0 }
 0x9cf   :  { %v1766_v9 = vadd.f32 1e-05, %v3825_v13  ;;  %v1760_v30 = vpop.f32.mrb[33].mxu0 }
 0x9d0   :  { %v1761_v23 = vadd.f32 1e-05, %v1760_v30 }
 0x9d1   :  { %4783 = vrsqrt.f32 %v1766_v9 }
 0x9d2   :  { %4785 = vrsqrt.f32 %v1761_v23  ;;  %v1821_v23 = vpop.permute.xlu0 %1820 }
 0x9d6   :  { %v3828_v58 = vpop.f32.mrb[34].mxu0 }
 0x9d7   :  { %v1776_v31 = vadd.f32 1e-05, %v3828_v58  ;;  %v1770_v25 = vpop.f32.mrb[35].mxu0  ;;  %v1817_v58 = vpop.permute.xlu1 %1816 }
 0x9d8   :  { %v1771_v62 = vadd.f32 1e-05, %v1770_v25 }
 0x9d9   :  { %4787 = vrsqrt.f32 %v1776_v31 }
 0x9da   :  { %4789 = vrsqrt.f32 %v1771_v62  ;;  %v4754_v62 = vld [vmem:[%s5864_s6 + $0x8] sm:$0xff]  }
 0x9db   :  { %v4784_v11 = vpop.eup %4783 }
 0x9dc   :  { %v4786_v24 = vpop.eup %4785  ;;  %v1800_v29 = vmul.f32 %v4784_v11, %v1789_v57 }
 0x9dd   :  { %v1799_v28 = vmul.f32 %v4786_v24, %v1785_v37 }
 0x9de   :  { %v1804_v2 = vmul.f32 %v1800_v29, %v1687_v10 }
 0x9df   :  { %v1803_v12 = vmul.f32 %v1799_v28, %v1686_v17 }
 0x9e0   :  { %v1824_v18 = vadd.f32 %v1813_v36, %v1804_v2 }
 0x9e1   :  { %v1823_v15 = vadd.f32 %v1809_v5, %v1803_v12  ;;  %v4853_v12 = vmov 12  }
 0x9e2   :  { %v1828_v1 = vmax.f32 %v1824_v18, 0.0  ;;  %4724 = vset.pattern.permute.xlu1 %v4853_v12  ;;  %4723 = vset.pattern.permute.xlu0 %v4853_v12  ;;  %v4854_v18 = vmov 13  }
 0x9e3   :  { %v4788_v54 = vpop.eup %4787  ;;  %v1827_v16 = vmax.f32 %v1823_v15, 0.0  ;;  %2105 = vperm.xlu1 %4724, %v5547_v26   ;;  %2101 = vperm.xlu0 %4723, %v5541_v14  }
 0x9e4   :  { %v4790_v39 = vpop.eup %4789  ;;  %v1802_v55 = vmul.f32 %v4788_v54, %v1797_v61  ;;  %v1843_v61 = vpop.permute.xlu0 %1842 }
 0x9e5   :  { %v1835_v7 = vpack.c.bf16 %v1828_v1, %v1827_v16  ;;  %v1801_v13 = vmul.f32 %v4790_v39, %v1793_v20 }
 0x9e6   :  { %v1806_v9 = vmul.f32 %v1802_v55, %v5567_v51  ;;  %v1839_v51 = vpop.permute.xlu1 %1838 }
 0x9e7   :  { %v1805_v30 = vmul.f32 %v1801_v13, %v1688_v34  ;;  %3829 = vmatprep.subr.bf16.mxu1 %v1835_v7  ;;  %2109 = vperm.xlu1 %4724, %v5553_v50  }
 0x9e8   :  { %v1826_v31 = vadd.f32 %v1821_v23, %v1806_v9  ;;  %3830 = vmatpush3.bf16.msra.mxu1 %v1835_v7  ;;  %2113 = vperm.xlu0 %4723, %v5560_v6   ;;  %v4855_v23 = vmov 0.0  }
 0x9e9   :  { %v1825_v10 = vadd.f32 %v1817_v58, %v1805_v30  ;;  %v2289_v58 = vld [vmem:[%s5867_s9 + $0x28] sm:$0xff] }
 0x9ea   :  { %v1830_v37 = vmax.f32 %v1826_v31, 0.0  ;;  %v1847_v34 = vpop.permute.xlu1 %1846  ;;  %v2288_v31 = vld [vmem:[%s5867_s9 + $0x20] sm:$0xff] }
 0x9eb   :  { %v1829_v17 = vmax.f32 %v1825_v10, 0.0  ;;  %4725 = vset.pattern.permute.xlu1 %v4854_v18  ;;  %v4857_v10 = vmov 16  }
 0x9ec   :  { %4726 = vset.pattern.permute.xlu0 %v4854_v18  ;;  %2125 = vperm.xlu1 %4725, %v5541_v14  }
 0x9ed   :  { %v1836_v25 = vpack.c.bf16 %v1830_v37, %v1829_v17  ;;  %2129 = vperm.xlu0 %4726, %v5547_v26   ;;  %v5674_v37 = vld [vmem:[%s5867_s9 + $0x8] sm:$0xff] }
 0x9ee   :  { %v1851_v2 = vpop.permute.xlu1 %1850 }
 0x9ef   :  { %3831 = vmatprep.subr.bf16.mxu1 %v1836_v25 }
 0x9f0   :  { %3832 = vmatpush3.bf16.msra.mxu1 %v1836_v25  ;;  %2133 = vperm.xlu1 %4725, %v5553_v50  }
 0x9f1   :  { %4410 = vmatprep.subr.bf16.mxu1 %v4987_v19  ;;  %4727 = vset.pattern.permute.xlu0 %v4857_v10 }
 0x9f2   :  { %2292 = vperm.xlu0 %4727, %v2288_v31  }
 0x9f3   :  { %3834 = vmatmul.mubr.msk.bf16.vlgmr.msra.gmra.mrb[36].mxu1 %vm1078_vm3, %v4754_v62 }
 0x9f4   :  { %4412 = vmatpush3.bf16.msra.mxu1 %v4987_v19  ;;  %2137 = vperm.xlu1 %4725, %v5560_v6  }
 0x9f5   :  { %4414 = vmatprep.subr.bf16.mxu1 %v4999_v22 }
 0x9f6   :  { %2233 = vperm.xlu0 %4727, %v5560_v6  }
 0x9f8   :  { %4416 = vmatpush3.bf16.msra.mxu1 %v4999_v22  ;;  %4728 = vset.pattern.permute.xlu1 %v4857_v10 }
 0x9f9   :  { %4418 = vmatprep.subr.bf16.mxu1 %v5024_v27  ;;  %2297 = vperm.xlu1 %4728, %v2289_v58  }
 0x9fa   :  { %2173 = vperm.xlu0 %4727, %v5674_v37  }
 0x9fc   :  { %4420 = vmatpush3.bf16.msra.mxu1 %v5024_v27 }
 0x9fd   :  { %4422 = vmatprep.subr.bf16.mxu1 %v5050_v32  ;;  %2229 = vperm.xlu1 %4728, %v5553_v50  }
 0xa00   :  { %4424 = vmatpush3.bf16.msra.mxu1 %v5050_v32 }
 0xa01   :  { %4426 = vmatprep.subr.bf16.mxu1 %v5062_v35 }
 0xa04   :  { %4428 = vmatpush3.bf16.msra.mxu1 %v5062_v35 }
 0xa05   :  { %4430 = vmatprep.subr.bf16.mxu1 %v5074_v38 }
 0xa08   :  { %4432 = vmatpush3.bf16.msra.mxu1 %v5074_v38 }
 0xa09   :  { %4434 = vmatprep.subr.bf16.mxu1 %v5086_v41 }
 0xa0c   :  { %4436 = vmatpush3.bf16.msra.mxu1 %v5086_v41 }
 0xa0d   :  { %4438 = vmatprep.subr.bf16.mxu1 %v5098_v46 }
 0xa10   :  { %4440 = vmatpush3.bf16.msra.mxu1 %v5098_v46 }
 0xa11   :  { %3913 = vmatprep.subr.bf16.mxu1 %v4855_v23 }
 0xa62   :  { %v2106_v17 = vpop.permute.xlu1 %2105 }
 0xa66   :  { %v2110_v6 = vpop.permute.xlu1 %2109 }
 0xac6   :  { %v3835_v20 = vpop.f32.mrb[36].mxu1 }
 0xac7   :  { %v1903_v57 = vpop.f32.mrb[37].mxu1  ;;  %v1912_v28 = vadd.f32 %v3835_v20, %v1847_v34 }
 0xac8   :  { %v1904_v11 = vadd.f32 %v1903_v57, %v1839_v51  ;;  %v3836_v24 = vpop.f32.mrb[38].mxu1  ;;  %v2102_v57 = vpop.permute.xlu0 %2101 }
 0xac9   :  { %v1906_v29 = vpop.f32.mrb[39].mxu1  ;;  %v1915_v5 = vadd.f32 %v3836_v24, %v1851_v2  ;;  %v2126_v24 = vpop.permute.xlu1 %2125 }
 0xaca   :  { %v1907_v36 = vadd.f32 %v1906_v29, %v1843_v61  ;;  %3869 = vmatprep.mubr.f32.mxu1 %v1904_v11 }
 0xacc   :  { %3870 = vmatmul.mubr.f32.vlgmr.msra.gmra.mrb[40].mxu1 %v1907_v36  ;;  %v2114_v29 = vpop.permute.xlu0 %2113 }
 0xacd   :  { %3872 = vmatprep.mubr.f32.mxu1 %v1912_v28  ;;  %v2134_v12 = vpop.permute.xlu1 %2133 }
 0xad0   :  { %3873 = vmatmul.mubr.f32.gmra.mrb[42].mxu1 %v1915_v5  ;;  %v2130_v18 = vpop.permute.xlu0 %2129 }
 0xad1   :  { %3917 = vmatprep.mubr.msk.bf16.mxu1 %vm4856_vm4, %v4855_v23 }
 0xb9f   :  { %v3871_v15 = vpop.f32.mrb[40].mxu1 }
 0xba0   :  { %v5623_v1 = vsub.f32 %v1907_v36, %v3871_v15  ;;  %v1984_v54 = vpop.f32.mrb[41].mxu1 }
 0xba1   :  { %v5625_v16 = vsub.f32 %v1904_v11, %v1984_v54 }
 0xba2   :  { %v2008_v7 = vmul.f32 %v5623_v1, %v5623_v1 }
 0xba3   :  { %v2007_v39 = vmul.f32 %v5625_v16, %v5625_v16  ;;  %v3874_v55 = vpop.f32.mrb[42].mxu1 }
 0xba4   :  { %v5631_v14 = vsub.f32 %v1915_v5, %v3874_v55  ;;  %v1994_v26 = vpop.f32.mrb[43].mxu1 }
 0xba5   :  { %v5633_v13 = vsub.f32 %v1912_v28, %v1994_v26  ;;  %3907 = vmatprep.mubr.f32.mxu0 %v2007_v39 }
 0xba6   :  { %3908 = vmatmul.mubr.f32.vlgmr.msra.gmra.mrb[36].mxu0 %v2008_v7  ;;  %v2010_v30 = vmul.f32 %v5631_v14, %v5631_v14 }
 0xba7   :  { %v2009_v9 = vmul.f32 %v5633_v13, %v5633_v13  ;;  %4476 = vmatpush3.bf16.msra.mxu0 %v4987_v19 }
 0xba8   :  { %4478 = vmatprep.subr.bf16.mxu0 %v4999_v22 }
 0xba9   :  { %3910 = vmatprep.mubr.f32.mxu0 %v2009_v9 }
 0xbaa   :  { %3911 = vmatmul.mubr.f32.gmra.mrb[38].mxu0 %v2010_v30 }
 0xbab   :  { %4480 = vmatpush3.bf16.msra.mxu0 %v4999_v22 }
 0xbac   :  { %4482 = vmatprep.subr.bf16.mxu0 %v5024_v27 }
 0xbaf   :  { %4484 = vmatpush3.bf16.msra.mxu0 %v5024_v27 }
 0xbb0   :  { %4486 = vmatprep.subr.bf16.mxu0 %v5050_v32 }
 0xbb3   :  { %4488 = vmatpush3.bf16.msra.mxu0 %v5050_v32 }
 0xbb4   :  { %4490 = vmatprep.subr.bf16.mxu0 %v5062_v35 }
 0xbb7   :  { %4492 = vmatpush3.bf16.msra.mxu0 %v5062_v35 }
 0xbb8   :  { %4494 = vmatprep.subr.bf16.mxu0 %v5074_v38 }
 0xbbb   :  { %4496 = vmatpush3.bf16.msra.mxu0 %v5074_v38 }
 0xbbc   :  { %4498 = vmatprep.subr.bf16.mxu0 %v5086_v41 }
 0xbbf   :  { %4500 = vmatpush3.bf16.msra.mxu0 %v5086_v41 }
 0xbc0   :  { %4502 = vmatprep.subr.bf16.mxu0 %v5098_v46 }
 0xbc3   :  { %4504 = vmatpush3.bf16.msra.mxu0 %v5098_v46 }
 0xbc4   :  { %3387 = vmatprep.subr.bf16.mxu0 %v5118_v52  ;;  %v5669_v52 = vld [vmem:[%s5867_s9] sm:$0xff] }
 0xbc5   :  { %2168 = vperm.xlu1 %4728, %v5669_v52  }
 0xc79   :  { %v3909_v25 = vpop.f32.mrb[36].mxu0 }
 0xc7a   :  { %v2083_v62 = vadd.f32 1e-05, %v3909_v25  ;;  %v2077_v50 = vpop.f32.mrb[37].mxu0  ;;  %v2138_v25 = vpop.permute.xlu1 %2137 }
 0xc7b   :  { %v2078_v51 = vadd.f32 1e-05, %v2077_v50 }
 0xc7c   :  { %4791 = vrsqrt.f32 %v2083_v62 }
 0xc7d   :  { %4793 = vrsqrt.f32 %v2078_v51  ;;  %v3912_v34 = vpop.f32.mrb[38].mxu0 }
 0xc7e   :  { %v2093_v20 = vadd.f32 1e-05, %v3912_v34  ;;  %v2087_v61 = vpop.f32.mrb[39].mxu0 }
 0xc7f   :  { %v2088_v11 = vadd.f32 1e-05, %v2087_v61 }
 0xc80   :  { %4795 = vrsqrt.f32 %v2093_v20 }
 0xc81   :  { %4797 = vrsqrt.f32 %v2088_v11  ;;  %v4755_v11 = vld [vmem:[%s5865_s7] sm:$0xff]  }
 0xc86   :  { %v4792_v36 = vpop.eup %4791 }
 0xc87   :  { %v4794_v28 = vpop.eup %4793  ;;  %v2117_v2 = vmul.f32 %v4792_v36, %v2106_v17 }
 0xc88   :  { %v2116_v5 = vmul.f32 %v4794_v28, %v2102_v57 }
 0xc89   :  { %v2121_v15 = vmul.f32 %v2117_v2, %v5623_v1 }
 0xc8a   :  { %v4796_v54 = vpop.eup %4795  ;;  %v2120_v39 = vmul.f32 %v2116_v5, %v5625_v16 }
 0xc8b   :  { %v4798_v55 = vpop.eup %4797  ;;  %v2119_v7 = vmul.f32 %v4796_v54, %v2114_v29  ;;  %v2141_v26 = vadd.f32 %v2130_v18, %v2121_v15  ;;  %v2293_v29 = vpop.permute.xlu0 %2292 }
 0xc8c   :  { %v2140_v9 = vadd.f32 %v2126_v24, %v2120_v39  ;;  %v2118_v30 = vmul.f32 %v4798_v55, %v2110_v6  ;;  %v2298_v24 = vpop.permute.xlu1 %2297 }
 0xc8d   :  { %v2123_v58 = vmul.f32 %v2119_v7, %v5631_v14  ;;  %v2145_v31 = vadd.f32 %v2141_v26, %v5481_v43 }
 0xc8e   :  { %v2144_v10 = vadd.f32 %v2140_v9, %v5483_v48  ;;  %v2122_v17 = vmul.f32 %v2118_v30, %v5633_v13 }
 0xc8f   :  { %v2143_v62 = vadd.f32 %v2138_v25, %v2123_v58  ;;  %vm2149_vm5 = vcmp.gt.f32.partialorder %v2145_v31, 0.0  ;;  %v2153_v1 = vmul.f32 0.01, %v2145_v31  ;;  %v2234_v28 = vpop.permute.xlu0 %2233 }
 0xc90   :  { %vm2148_vm6 = vcmp.gt.f32.partialorder %v2144_v10, 0.0  ;;  %v2152_v50 = vmul.f32 0.01, %v2144_v10  ;;  %v2142_v16 = vadd.f32 %v2134_v12, %v2122_v17  ;;  %v2230_v36 = vpop.permute.xlu1 %2229 }
 0xc91   :  { %v2147_v51 = vadd.f32 %v2143_v62, %v5487_v44  ;;  %v2157_v34 = vsel %vm2149_vm5, %v2145_v31, %v2153_v1  ;;  %v4756_v44 = vld [vmem:[%s5865_s7 + $0x8] sm:$0xff]  }
 0xc92   :  { %v2156_v20 = vsel %vm2148_vm6, %v2144_v10, %v2152_v50  ;;  %v2146_v6 = vadd.f32 %v2142_v16, %v5489_v49  ;;  %v4757_v49 = vld [vmem:[%s5865_s7 + $0x10] sm:$0xff]  }
 0xc93   :  { %vm2151_vm8 = vcmp.gt.f32.partialorder %v2147_v51, 0.0  ;;  %v2155_v14 = vmul.f32 0.01, %v2147_v51  ;;  %v2160_v43 = vpack.c.bf16 %v2157_v34, %v2156_v20  ;;  %v2174_v12 = vpop.permute.xlu0 %2173 }
 0xc94   :  { %vm2150_vm9 = vcmp.gt.f32.partialorder %v2146_v6, 0.0  ;;  %v2154_v48 = vmul.f32 0.01, %v2146_v6  ;;  %v2169_v2 = vpop.permute.xlu1 %2168 }
 0xc95   :  { %v2159_v57 = vsel %vm2151_vm8, %v2147_v51, %v2155_v14  ;;  %3914 = vmatpush3.bf16.msra.mxu1 %v2160_v43 }
 0xc96   :  { %v2158_v13 = vsel %vm2150_vm9, %v2146_v6, %v2154_v48  ;;  %3915 = vmatprep.subr.bf16.mxu1 %v4855_v23 }
 0xc97   :  { %v2161_v61 = vpack.c.bf16 %v2159_v57, %v2158_v13 }
 0xc99   :  { %3916 = vmatpush3.bf16.msra.mxu1 %v2161_v61 }
 0xc9a   :  { %3921 = vmatprep.subr.bf16.mxu1 %v4855_v23 }
 0xc9c   :  { %3918 = vmatmul.mubr.msk.bf16.vlgmr.msra.gmra.mrb[44].mxu1 %vm1078_vm3, %v4755_v11 }
 0xc9d   :  { %3922 = vmatpush3.bf16.msra.mxu1 %v2160_v43  ;;  %3925 = vmatprep.mubr.msk.bf16.mxu1 %vm4856_vm4, %v4855_v23 }
 0xc9e   :  { %3923 = vmatprep.subr.bf16.mxu1 %v4855_v23 }
 0xca1   :  { %3924 = vmatpush3.bf16.msra.mxu1 %v2161_v61 }
 0xca2   :  { %3929 = vmatprep.subr.bf16.mxu1 %v4855_v23 }
 0xca4   :  { %3926 = vmatmul.mubr.msk.bf16.vlgmr.msra.gmra.mrb[48].mxu1 %vm1078_vm3, %v4756_v44 }
 0xca5   :  { %3930 = vmatpush3.bf16.msra.mxu1 %v2160_v43  ;;  %3933 = vmatprep.mubr.msk.bf16.mxu1 %vm4856_vm4, %v4855_v23 }
 0xca6   :  { %3931 = vmatprep.subr.bf16.mxu1 %v4855_v23 }
 0xca9   :  { %3932 = vmatpush3.bf16.msra.mxu1 %v2161_v61 }
 0xcaa   :  { %4506 = vmatprep.subr.bf16.mxu1 %v4987_v19 }
 0xcac   :  { %3934 = vmatmul.mubr.msk.bf16.vlgmr.msra.gmra.mrb[52].mxu1 %vm1078_vm3, %v4757_v49 }
 0xcad   :  { %4508 = vmatpush3.bf16.msra.mxu1 %v4987_v19 }
 0xcae   :  { %4510 = vmatprep.subr.bf16.mxu1 %v4999_v22 }
 0xcb1   :  { %4512 = vmatpush3.bf16.msra.mxu1 %v4999_v22 }
 0xcb2   :  { %4514 = vmatprep.subr.bf16.mxu1 %v5024_v27 }
 0xcb5   :  { %4516 = vmatpush3.bf16.msra.mxu1 %v5024_v27 }
 0xcb6   :  { %4518 = vmatprep.subr.bf16.mxu1 %v5050_v32 }
 0xcb9   :  { %4520 = vmatpush3.bf16.msra.mxu1 %v5050_v32 }
 0xcba   :  { %4522 = vmatprep.subr.bf16.mxu1 %v5062_v35 }
 0xcbd   :  { %4524 = vmatpush3.bf16.msra.mxu1 %v5062_v35 }
 0xcbe   :  { %4526 = vmatprep.subr.bf16.mxu1 %v5074_v38 }
 0xcc1   :  { %4528 = vmatpush3.bf16.msra.mxu1 %v5074_v38 }
 0xcc2   :  { %4530 = vmatprep.subr.bf16.mxu1 %v5086_v41 }
 0xcc5   :  { %4532 = vmatpush3.bf16.msra.mxu1 %v5086_v41 }
 0xcc6   :  { %4534 = vmatprep.subr.bf16.mxu1 %v5098_v46 }
 0xcc9   :  { %4536 = vmatpush3.bf16.msra.mxu1 %v5098_v46 }
 0xcca   :  { %4538 = vmatprep.subr.bf16.mxu1 %v4987_v19 }
 0xd6f   :  { %v2218_v5 = vpop.f32.mrb[44].mxu1 }
 0xd70   :  { %v3919_v18 = vpop.f32.mrb[45].mxu1  ;;  %v2219_v54 = vadd.f32 %v2218_v5, %v2169_v2 }
 0xd71   :  { %v2221_v15 = vpop.f32.mrb[46].mxu1 }
 0xd72   :  { %v2222_v39 = vadd.f32 %v2221_v15, %v2174_v12  ;;  %v3920_v55 = vpop.f32.mrb[47].mxu1 }
 0xd74   :  { %v2225_v7 = vpack.c.bf16 %v2222_v39, %v2219_v54 }
 0xd77   :  { %v2278_v26 = vpop.f32.mrb[48].mxu1 }
 0xd78   :  { %v3927_v9 = vpop.f32.mrb[49].mxu1  ;;  %v2279_v58 = vadd.f32 %v2278_v26, %v2230_v36 }
 0xd79   :  { %v2281_v30 = vpop.f32.mrb[50].mxu1 }
 0xd7a   :  { %v2282_v31 = vadd.f32 %v2281_v30, %v2234_v28  ;;  %v3928_v10 = vpop.f32.mrb[51].mxu1 }
 0xd7c   :  { %v2285_v17 = vpack.c.bf16 %v2282_v31, %v2279_v58  ;;  %v4758_v31 = vld [vmem:[%s5866_s8] sm:$0xff]   ;;  %s4865_s8 = smov [#allocation3]  }
 0xd7d   :  { %s2996_s16 = sshll.u32 %s4865_s8, 4  ;;  %s2997_s16 = int_to_ptr.vmem [resolvable:$true] %s2996_s16 }
 0xd7e   :  { %s4817_s5 = scalar_lea.vmem %s2997_s16, 256  ;;  %p4822_p1 = scmp.lt.s32.totalorder %s2997_s16, %s2997_s16 }
 0xd7f   :  { %v2342_v25 = vpop.f32.mrb[52].mxu1  ;;  %p4818_p0 = scmp.ne.s32.totalorder %s2997_s16, %s4817_s5  ;;  %p4823_p2 = scmp.lt.s32.totalorder %s4817_s5, %s4817_s5 }
 0xd80   :  { %v5724_v62 = vadd.f32 %v2342_v25, %v2293_v29  ;;  %v3935_v1 = vpop.f32.mrb[53].mxu1 }
 0xd81   :  { %v2345_v50 = vpop.f32.mrb[54].mxu1  ;;  %p4824_p3 = por %p4823_p2, %p4822_p1 }
 0xd82   :  { %v5726_v16 = vadd.f32 %v2345_v50, %v2298_v24  ;;  %v3936_v51 = vpop.f32.mrb[55].mxu1  ;;  %3969 = vmatprep.mubr.f32.mxu0 %v5724_v62 }
 0xd83   :  { %p4825_p4 = pnand %p4824_p3, %p4818_p0 }
 0xd84   :  { %3970 = vmatmul.mubr.f32.vlgmr.msra.gmra.mrb[40].mxu0 %v5726_v16 }
 0xd85   :  { %3388 = vmatpush3.bf16.msra.mxu0 %v5219_v40  ;;  %2559 = vmatprep.mubr.bf16.mxu0 %v2285_v17  ;;  %v4863_v40 = vmov 20  }
 0xd86   :  { %3389 = vmatprep.subr.bf16.mxu0 %v5130_v56  ;;  %v4858_v56 = vmov 17  }
 0xd87   :  { %4729 = vset.pattern.permute.xlu1 %v4858_v56  ;;  %4730 = vset.pattern.permute.xlu0 %v4858_v56 }
 0xd88   :  { %2725 = vperm.xlu1 %4729, %v5669_v52   ;;  %2729 = vperm.xlu0 %4730, %v5674_v37  }
 0xd89   :  { %3390 = vmatpush3.bf16.msra.mxu0 %v5233_v47 }
 0xd8a   :  { %3391 = vmatprep.subr.bf16.mxu0 %v5140_v60  ;;  %v4859_v60 = vmov 18  }
 0xd8c   :  { %4731 = vset.pattern.permute.xlu1 %v4859_v60 }
 0xd8d   :  { %3392 = vmatpush3.bf16.msra.mxu0 %v5244_v21  ;;  %2737 = vperm.xlu1 %4731, %v5669_v52  }
 0xd8e   :  { %3393 = vmatprep.subr.bf16.mxu0 %v5150_v0  ;;  %v4860_v0 = vmov 19  }
 0xd8f   :  { %4732 = vset.pattern.permute.xlu0 %v4860_v0 }
 0xd90   :  { %2752 = vperm.xlu0 %4732, %v5669_v52  }
 0xd91   :  { %3394 = vmatpush3.bf16.msra.mxu0 %v5252_v59  ;;  %2741 = vperm.xlu1 %4731, %v5674_v37  }
 0xd92   :  { %3395 = vmatprep.subr.bf16.mxu0 %v5160_v4  ;;  %v4861_v4 = vmov 22  }
 0xd94   :  { %4735 = vset.pattern.permute.xlu0 %v4861_v4 }
 0xd95   :  { %3396 = vmatpush3.bf16.msra.mxu0 %v5260_v63  ;;  %2510 = vperm.xlu0 %4735, %v5674_v37  }
 0xd96   :  { %3397 = vmatprep.subr.bf16.mxu0 %v5170_v8  ;;  %4733 = vset.pattern.permute.xlu1 %v4860_v0  ;;  %v4862_v8 = vmov 23  }
 0xd97   :  { %2756 = vperm.xlu1 %4733, %v5674_v37  }
 0xd99   :  { %3398 = vmatpush3.bf16.msra.mxu0 %v5268_v3  ;;  %4737 = vset.pattern.permute.xlu0 %v4862_v8 }
 0xd9a   :  { %3399 = vmatprep.subr.bf16.mxu0 %v5897_v42  ;;  %2518 = vperm.xlu0 %4737, %v5669_v52  }
 0xd9b   :  { %4734 = vset.pattern.permute.xlu1 %v4861_v4 }
 0xd9c   :  { %2506 = vperm.xlu1 %4734, %v5669_v52  }
 0xd9d   :  { %3400 = vmatpush3.bf16.msra.mxu0 %v5898_v45 }
 0xd9e   :  { %3401 = vmatprep.subr.bf16.mxu0 %v5899_v53 }
 0xda0   :  { %4736 = vset.pattern.permute.xlu1 %v4863_v40 }
 0xda1   :  { %3402 = vmatpush3.bf16.msra.mxu0 %v5900_v33  ;;  %2966 = vperm.xlu1 %4736, %v5669_v52  }
 0xda2   :  { %4570 = vmatprep.subr.bf16.mxu0 %v4987_v19 }
 0xda4   :  { %2560 = vmatmul.mubr.bf16.vlgmr.msra.gmra.mrb[44].mxu0 %v2225_v7 }
 0xda5   :  { %4572 = vmatpush3.bf16.msra.mxu0 %v4987_v19  ;;  %2970 = vperm.xlu1 %4736, %v5674_v37  }
 0xda6   :  { %4574 = vmatprep.subr.bf16.mxu0 %v4999_v22 }
 0xda9   :  { %4576 = vmatpush3.bf16.msra.mxu0 %v4999_v22  ;;  %4738 = vset.pattern.permute.xlu1 %v4862_v8 }
 0xdaa   :  { %4578 = vmatprep.subr.bf16.mxu0 %v5024_v27  ;;  %2522 = vperm.xlu1 %4738, %v5674_v37  }
 0xdad   :  { %4580 = vmatpush3.bf16.msra.mxu0 %v5024_v27 }
 0xdae   :  { %4582 = vmatprep.subr.bf16.mxu0 %v5050_v32 }
 0xdb1   :  { %4584 = vmatpush3.bf16.msra.mxu0 %v5050_v32 }
 0xdb2   :  { %4586 = vmatprep.subr.bf16.mxu0 %v5062_v35 }
 0xdb5   :  { %4588 = vmatpush3.bf16.msra.mxu0 %v5062_v35 }
 0xdb6   :  { %4590 = vmatprep.subr.bf16.mxu0 %v5074_v38 }
 0xdb9   :  { %4592 = vmatpush3.bf16.msra.mxu0 %v5074_v38 }
 0xdba   :  { %4594 = vmatprep.subr.bf16.mxu0 %v5086_v41 }
 0xdbd   :  { %4596 = vmatpush3.bf16.msra.mxu0 %v5086_v41 }
 0xdbe   :  { %4598 = vmatprep.subr.bf16.mxu0 %v5098_v46 }
 0xdc1   :  { %4600 = vmatpush3.bf16.msra.mxu0 %v5098_v46 }
 0xdc2   :  { %4634 = vmatprep.subr.bf16.mxu0 %v4987_v19 }
 0xe07   :  { %v2726_v36 = vpop.permute.xlu1 %2725  ;;  %v2730_v5 = vpop.permute.xlu0 %2729 }
 0xe0c   :  { %v2738_v28 = vpop.permute.xlu1 %2737 }
 0xe10   :  { %v2742_v39 = vpop.permute.xlu1 %2741 }
 0xe16   :  { %v2757_v10 = vpop.permute.xlu1 %2756 }
 0xe1b   :  { %v2507_v60 = vpop.permute.xlu1 %2506 }
 0xe20   :  { %v2967_v0 = vpop.permute.xlu1 %2966 }
 0xe57   :  { %v3971_v47 = vpop.f32.mrb[40].mxu0 }
 0xe58   :  { %v5775_v21 = vsub.f32 %v5726_v16, %v3971_v47  ;;  %v2415_v59 = vpop.f32.mrb[41].mxu0  ;;  %v2971_v47 = vpop.permute.xlu1 %2970 }
 0xe59   :  { %v5778_v63 = vsub.f32 %v5724_v62, %v2415_v59  ;;  %v4864_v62 = vmov 21  }
 0xe5a   :  { %v2427_v42 = vmul.f32 %v5775_v21, %v5775_v21  ;;  %4740 = vset.pattern.permute.xlu0 %v4864_v62  ;;  %4739 = vset.pattern.permute.xlu1 %v4864_v62 }
 0xe5b   :  { %v2426_v3 = vmul.f32 %v5778_v63, %v5778_v63  ;;  %2982 = vperm.xlu0 %4740, %v5674_v37   ;;  %2978 = vperm.xlu1 %4739, %v5669_v52  }
 0xe5d   :  { %4004 = vmatprep.mubr.f32.mxu1 %v2426_v3 }
 0xe5e   :  { %4005 = vmatmul.mubr.f32.vlgmr.msra.gmra.mrb[56].mxu1 %v2427_v42 }
 0xe5f   :  { %4540 = vmatpush3.bf16.msra.mxu1 %v4987_v19 }
 0xe60   :  { %4542 = vmatprep.subr.bf16.mxu1 %v4999_v22 }
 0xe63   :  { %4544 = vmatpush3.bf16.msra.mxu1 %v4999_v22 }
 0xe64   :  { %4546 = vmatprep.subr.bf16.mxu1 %v5024_v27 }
 0xe67   :  { %4548 = vmatpush3.bf16.msra.mxu1 %v5024_v27 }
 0xe68   :  { %4550 = vmatprep.subr.bf16.mxu1 %v5050_v32 }
 0xe6b   :  { %4552 = vmatpush3.bf16.msra.mxu1 %v5050_v32 }
 0xe6c   :  { %4554 = vmatprep.subr.bf16.mxu1 %v5062_v35 }
 0xe6f   :  { %4556 = vmatpush3.bf16.msra.mxu1 %v5062_v35 }
 0xe70   :  { %4558 = vmatprep.subr.bf16.mxu1 %v5074_v38 }
 0xe73   :  { %4560 = vmatpush3.bf16.msra.mxu1 %v5074_v38 }
 0xe74   :  { %4562 = vmatprep.subr.bf16.mxu1 %v5086_v41 }
 0xe77   :  { %v3403_v45 = vpop.f32.mrb[44].mxu0  ;;  %4564 = vmatpush3.bf16.msra.mxu1 %v5086_v41 }
 0xe78   :  { %v3404_v53 = vpop.f32.mrb[45].mxu0  ;;  %4566 = vmatprep.subr.bf16.mxu1 %v5098_v46 }
 0xe79   :  { %v3405_v33 = vadd.f32 %v3404_v53, %v3403_v45  ;;  %v3406_v34 = vpop.f32.mrb[46].mxu0 }
 0xe7a   :  { %v3407_v20 = vpop.f32.mrb[47].mxu0 }
 0xe7b   :  { %v3408_v6 = vadd.f32 %v3407_v20, %v3406_v34  ;;  %4568 = vmatpush3.bf16.msra.mxu1 %v5098_v46  ;;  %4039 = vmatprep.mubr.f32.mxu1 %v3405_v33 }
 0xe7c   :  { %4077 = vmatprep.subr.bf16.mxu1 %v4855_v23 }
 0xe7e   :  { %4040 = vmatmul.mubr.f32.vlgmr.msra.gmra.mrb[58].mxu1 %v3408_v6 }
 0xe7f   :  { %4079 = vmatprep.mubr.msk.bf16.mxu1 %vm4856_vm4, %v4855_v23 }
 0xf31   :  { %v5802_v14 = vpop.f32.mrb[56].mxu1 }
 0xf32   :  { %v5804_v43 = vpop.f32.mrb[57].mxu1  ;;  %v2500_v51 = vadd.f32 1e-05, %v5802_v14 }
 0xf33   :  { %v2495_v56 = vadd.f32 1e-05, %v5804_v43 }
 0xf51   :  { %v4041_v48 = vpop.f32.mrb[58].mxu1 }
 0xf52   :  { %v2644_v57 = vsub.f32 %v3408_v6, %v4041_v48  ;;  %v2634_v13 = vpop.f32.mrb[59].mxu1 }
 0xf53   :  { %v2643_v61 = vsub.f32 %v3405_v33, %v2634_v13  ;;  %v2523_v33 = vpop.permute.xlu1 %2522 }
 0xf54   :  { %v2646_v44 = vmul.f32 %v2644_v57, %v2644_v57 }
 0xf55   :  { %v2645_v11 = vmul.f32 %v2643_v61, %v2643_v61 }
 0xf57   :  { %4074 = vmatprep.mubr.f32.mxu0 %v2645_v11 }
 0xf58   :  { %4075 = vmatmul.mubr.f32.vlgmr.msra.gmra.mrb[42].mxu0 %v2646_v44 }
 0xf59   :  { %4636 = vmatpush3.bf16.msra.mxu0 %v4987_v19 }
 0xf5a   :  { %4638 = vmatprep.subr.bf16.mxu0 %v4999_v22 }
 0xf5d   :  { %4640 = vmatpush3.bf16.msra.mxu0 %v4999_v22 }
 0xf5e   :  { %4642 = vmatprep.subr.bf16.mxu0 %v5024_v27 }
 0xf61   :  { %4644 = vmatpush3.bf16.msra.mxu0 %v5024_v27 }
 0xf62   :  { %4646 = vmatprep.subr.bf16.mxu0 %v5050_v32 }
 0xf65   :  { %4648 = vmatpush3.bf16.msra.mxu0 %v5050_v32 }
 0xf66   :  { %4650 = vmatprep.subr.bf16.mxu0 %v5062_v35 }
 0xf69   :  { %4652 = vmatpush3.bf16.msra.mxu0 %v5062_v35 }
 0xf6a   :  { %4654 = vmatprep.subr.bf16.mxu0 %v5074_v38 }
 0xf6d   :  { %4656 = vmatpush3.bf16.msra.mxu0 %v5074_v38 }
 0xf6e   :  { %4658 = vmatprep.subr.bf16.mxu0 %v5086_v41 }
 0xf71   :  { %4660 = vmatpush3.bf16.msra.mxu0 %v5086_v41 }
 0xf72   :  { %4662 = vmatprep.subr.bf16.mxu0 %v5098_v46 }
 0xf75   :  { %4664 = vmatpush3.bf16.msra.mxu0 %v5098_v46 }
0x102b   :  { %v4076_v23 = vpop.f32.mrb[42].mxu0 }
0x102c   :  { %v2719_v49 = vadd.f32 1e-05, %v4076_v23  ;;  %v2713_v24 = vpop.f32.mrb[43].mxu0 }
0x102d   :  { %v2714_v29 = vadd.f32 1e-05, %v2713_v24 }
0x102e   :  { %4799 = vrsqrt.f32 %v2719_v49 }
0x102f   :  { %4801 = vrsqrt.f32 %v2714_v29 }
0x1030   :  { %4803 = vrsqrt.f32 %v2500_v51 }
0x1031   :  { %4805 = vrsqrt.f32 %v2495_v56 }
0x1038   :  { %v4800_v2 = vpop.eup %4799 }
0x1039   :  { %v4802_v12 = vpop.eup %4801  ;;  %v2733_v18 = vmul.f32 %v4800_v2, %v2730_v5 }
0x103a   :  { %v2732_v15 = vmul.f32 %v4802_v12, %v2726_v36  ;;  %v4804_v59 = vpop.eup %4803 }
0x103b   :  { %v2735_v54 = vmul.f32 %v2733_v18, %v2644_v57  ;;  %v4806_v3 = vpop.eup %4805 }
0x103c   :  { %v2734_v55 = vmul.f32 %v2732_v15, %v2643_v61  ;;  %v2513_v45 = vmul.f32 %v4806_v3, %v2507_v60  ;;  %v2979_v61 = vpop.permute.xlu1 %2978 }
0x103d   :  { %v2745_v7 = vadd.f32 %v2742_v39, %v2735_v54 }
0x103e   :  { %v2744_v26 = vadd.f32 %v2738_v28, %v2734_v55  ;;  %v2515_v43 = vmul.f32 %v2513_v45, %v5778_v63 }
0x103f   :  { %v2747_v9 = vmax.f32 %v2745_v7, 0.0 }
0x1040   :  { %v2746_v30 = vmax.f32 %v2744_v26, 0.0 }
0x1042   :  { %v2750_v58 = vpack.c.bf16 %v2747_v9, %v2746_v30 }
0x1044   :  { %4078 = vmatpush3.bf16.msra.mxu1 %v2750_v58 }
0x1045   :  { %4602 = vmatprep.subr.bf16.mxu1 %v4987_v19 }
0x1047   :  { %4080 = vmatmul.mubr.msk.bf16.vlgmr.msra.gmra.mrb[60].mxu1 %vm2764_vm10, %v4758_v31 }
0x1048   :  { %4604 = vmatpush3.bf16.msra.mxu1 %v4987_v19  ;;  %v2753_v19 = vpop.permute.xlu0 %2752 }
0x1049   :  { %4606 = vmatprep.subr.bf16.mxu1 %v4999_v22 }
0x104c   :  { %4608 = vmatpush3.bf16.msra.mxu1 %v4999_v22  ;;  %v2511_v40 = vpop.permute.xlu0 %2510 }
0x104d   :  { %4610 = vmatprep.subr.bf16.mxu1 %v5024_v27  ;;  %v2514_v42 = vmul.f32 %v4804_v59, %v2511_v40 }
0x104f   :  { %v2516_v6 = vmul.f32 %v2514_v42, %v5775_v21 }
0x1050   :  { %4612 = vmatpush3.bf16.msra.mxu1 %v5024_v27  ;;  %v2519_v53 = vpop.permute.xlu0 %2518 }
0x1051   :  { %4614 = vmatprep.subr.bf16.mxu1 %v5050_v32  ;;  %v2526_v44 = vadd.f32 %v2523_v33, %v2516_v6  ;;  %v2525_v49 = vadd.f32 %v2519_v53, %v2515_v43 }
0x1054   :  { %4616 = vmatpush3.bf16.msra.mxu1 %v5050_v32  ;;  %v2983_v48 = vpop.permute.xlu0 %2982 }
0x1055   :  { %4618 = vmatprep.subr.bf16.mxu1 %v5062_v35 }
0x1058   :  { %4620 = vmatpush3.bf16.msra.mxu1 %v5062_v35 }
0x1059   :  { %4622 = vmatprep.subr.bf16.mxu1 %v5074_v38 }
0x105c   :  { %4624 = vmatpush3.bf16.msra.mxu1 %v5074_v38 }
0x105d   :  { %4626 = vmatprep.subr.bf16.mxu1 %v5086_v41 }
0x1060   :  { %4628 = vmatpush3.bf16.msra.mxu1 %v5086_v41 }
0x1061   :  { %4630 = vmatprep.subr.bf16.mxu1 %v5098_v46 }
0x1064   :  { %4632 = vmatpush3.bf16.msra.mxu1 %v5098_v46 }
0x111a   :  { %v2802_v22 = vpop.f32.mrb[60].mxu1 }
0x111b   :  { %v2803_v27 = vadd.f32 %v2802_v22, %v2753_v19  ;;  %v4081_v32 = vpop.f32.mrb[61].mxu1 }
0x111c   :  { %v2805_v17 = vpop.f32.mrb[62].mxu1 }
0x111d   :  { %v2806_v25 = vadd.f32 %v2805_v17, %v2757_v10  ;;  %v4082_v35 = vpop.f32.mrb[63].mxu1  ;;  %4115 = vmatprep.mubr.f32.mxu1 %v2803_v27 }
0x111f   :  { %4116 = vmatmul.mubr.f32.vlgmr.msra.gmra.mrb[64].mxu1 %v2806_v25 }
0x11f2   :  { %v4117_v38 = vpop.f32.mrb[64].mxu1 }
0x11f3   :  { %v2885_v41 = vsub.f32 %v2806_v25, %v4117_v38  ;;  %v2875_v46 = vpop.f32.mrb[65].mxu1 }
0x11f4   :  { %v2884_v1 = vsub.f32 %v2803_v27, %v2875_v46 }
0x11f5   :  { %v2887_v16 = vmul.f32 %v2885_v41, %v2885_v41 }
0x11f6   :  { %v2886_v50 = vmul.f32 %v2884_v1, %v2884_v1 }
0x11f8   :  { %4150 = vmatprep.mubr.f32.mxu0 %v2886_v50 }
0x11f9   :  { %4151 = vmatmul.mubr.f32.vlgmr.msra.gmra.mrb[48].mxu0 %v2887_v16 }
0x12cc   :  { %v4152_v4 = vpop.f32.mrb[48].mxu0 }
0x12cd   :  { %v2960_v37 = vadd.f32 1e-05, %v4152_v4  ;;  %v2954_v8 = vpop.f32.mrb[49].mxu0 }
0x12ce   :  { %v2955_v52 = vadd.f32 1e-05, %v2954_v8 }
0x12cf   :  { %4807 = vrsqrt.f32 %v2960_v37 }
0x12d0   :  { %4809 = vrsqrt.f32 %v2955_v52 }
0x12d9   :  { %v4808_v34 = vpop.eup %4807 }
0x12da   :  { %v4810_v20 = vpop.eup %4809  ;;  %v2974_v14 = vmul.f32 %v4808_v34, %v2971_v47 }
0x12db   :  { %v2973_v57 = vmul.f32 %v4810_v20, %v2967_v0 }
0x12dc   :  { %v2976_v13 = vmul.f32 %v2974_v14, %v2885_v41 }
0x12dd   :  { %v2975_v11 = vmul.f32 %v2973_v57, %v2884_v1 }
0x12de   :  { %v2986_v23 = vadd.f32 %v2983_v48, %v2976_v13 }
0x12df   :  { %v2985_v24 = vadd.f32 %v2979_v61, %v2975_v11 }
0x12e0   :  { %v2988_v29 = vadd.f32 %v2986_v23, %v2526_v44 }
0x12e1   :  { %v2987_v36 = vadd.f32 %v2985_v24, %v2525_v49 }
0x12e2   :  { %2990 = vst [vmem:[#allocation3 + $0x8] sm:$0xff] %v2988_v29 }
0x12e3   :  { %2989 = vst [vmem:[#allocation3] sm:$0xff] %v2987_v36 }
0x12e4   :  { %4828 = shalt.err (!%p4825_p4)
}
0x12e5   :  { %s4829_s0 = scalar_lea.hbm %s5868_s10, 256 }
0x12e6   :  { %p4830_p5 = scmp.ne.s32.totalorder %s5868_s10, %s4829_s0  ;;  %p4833_p6 = scmp.lt.u32.totalorder %s4829_s0, %s5868_s10 }
0x12e8   :  { %p4835_p7 = pnand %p4833_p6, %p4830_p5 }
0x12ea   :  { %4838 = shalt.err (!%p4835_p7)
}
0x12eb   :  { %s4866_s22 = smov 128   ;;  %s4867_s23 = smov 8  }
0x12ec   :  { %3002 = dma.vmem_to_hbm [thread:$0]  %s2997_s16, 256, %s5868_s10, [#allocation4], %s4866_s22, %s4866_s22, %s4867_s23  }
0x12ed   :  { %4839 = dma.done.wait [#allocation4], 256  }
0x12ee   :  { %4840 = vsyncadd [#allocation4], 4294967040 }
0x12ef   :  { %3006 = vsyncpa [#allocation4], 1 }

</bundles_post_ra>
